<compile_context>
chip_gen: v7x
topology: tpu7x:2x2x1
jax: 0.10.0
libtpu: 0.0.40
codegen_flags: <defaults>
</compile_context>

<pallas_src>
import functools

import jax
import jax.numpy as jnp
from jax.experimental import pallas as pl
from jax.experimental.pallas import tpu as pltpu

N_EMBD = 64
N_HEAD = 4
BLOCK_SIZE = 8
N_LAYERS = 2
LN_EPS = 1e-5  # PyTorch nn.LayerNorm default eps


def _layernorm(x, gamma, beta):
  mu = jnp.mean(x, axis=-1, keepdims=True)
  xc = x - mu
  var = jnp.mean(xc * xc, axis=-1, keepdims=True)
  return xc * jax.lax.rsqrt(var + LN_EPS) * gamma + beta


def encoder_kernel(x_ref, g1_ref, b1_ref, wqkv_ref, g2_ref, b2_ref,
                   w1_ref, bb1_ref, w2_ref, bb2_ref, o_ref,
                   *, batch, seq, n_head, n_layers):
  """All encoder blocks, fused in a single kernel; activation stays in VMEM."""
  B, T, H = batch, seq, n_head
  BT, C = x_ref.shape
  hd = C // H
  scale = float(hd) ** -0.5          # (n_embd // n_head) ** -0.5

  x2d = x_ref[...]                   # (B*T, C) f32 (input already f32, no cast)

  def to_heads(z2d, base):
    # Gather head columns [base + h*hd, base+(h+1)*hd) into a leading head axis.
    # All reshapes here only touch dims above the minor dim (sublane-aligned).
    parts = [z2d[:, base + h * hd: base + (h + 1) * hd] for h in range(H)]
    zh = jnp.stack(parts, axis=0)          # (H, B*T, hd)
    zh = zh.reshape(H, B, T, hd)           # split second-minor dim
    return zh.reshape(H * B, T, hd)        # merge leading dims -> single batch

  for l in range(n_layers):                # static loop: layers stay fused
    # --- ln1 ---
    xn = _layernorm(x2d, g1_ref[l], b1_ref[l])                  # (BT, C) f32

    # --- fused Q|K|V projection: one (BT,C) @ (C,3C) MXU matmul, bf16 in ---
    qkv = jnp.dot(xn.astype(jnp.bfloat16), wqkv_ref[l],
                  preferred_element_type=jnp.float32)           # (BT, 3C) f32

    qh = to_heads(qkv, 0 * C)            # (H*B, T, hd)
    kh = to_heads(qkv, 1 * C)
    vh = to_heads(qkv, 2 * C)

    # --- batched scaled dot-product attention over all heads (mask=None) ---
    s = jnp.einsum('btd,bsd->bts',
                   qh.astype(jnp.bfloat16), kh.astype(jnp.bfloat16),
                   preferred_element_type=jnp.float32) * scale   # (H*B, T, T)
    s = s - jnp.max(s, axis=-1, keepdims=True)
    p = jnp.exp(s)
    p = p * pl.reciprocal(jnp.sum(p, axis=-1, keepdims=True), approx=True)
    out_h = jnp.einsum('bts,bsd->btd',
                       p.astype(jnp.bfloat16), vh.astype(jnp.bfloat16),
                       preferred_element_type=jnp.float32)       # (H*B, T, hd)

    # heads back onto the channel (lane) axis: (H*B,T,hd) -> (B*T, C)
    out_h = out_h.reshape(H, B, T, hd)
    attn = jnp.concatenate([out_h[h] for h in range(H)], axis=-1)  # (B, T, C)
    attn2d = attn.reshape(BT, C)

    x1 = x2d = xn + attn2d              # residual uses ln1 output (ref semantics)

    # --- ln2 + feed-forward: Linear(C,4C) -> ReLU -> Linear(4C,C) ---
    x2 = _layernorm(x1, g2_ref[l], b2_ref[l])
    h1 = jnp.maximum(
        jnp.dot(x2.astype(jnp.bfloat16), w1_ref[l],
                preferred_element_type=jnp.float32) + bb1_ref[l], 0.0)
    ff = jnp.dot(h1.astype(jnp.bfloat16), w2_ref[l],
                 preferred_element_type=jnp.float32) + bb2_ref[l]
    x2d = x2 + ff                        # Dropout = identity (eval mode)

  o_ref[...] = x2d.astype(o_ref.dtype)


def stack_block_params(params_list):
  """Stack per-layer params along a leading L axis; matmul weights in bf16."""
  cat = lambda k: jnp.stack([p[k] for p in params_list], axis=0)
  wqkv = jnp.stack(
      [jnp.concatenate([p['wq'], p['wk'], p['wv']], axis=1) for p in params_list],
      axis=0)                                              # (L, C, 3C)
  return dict(
      g1=cat('g1'), b1=cat('b1'),
      wqkv=wqkv.astype(jnp.bfloat16),
      g2=cat('g2'), b2=cat('b2'),
      w1=cat('w1').astype(jnp.bfloat16), bb1=cat('bb1'),
      w2=cat('w2').astype(jnp.bfloat16), bb2=cat('bb2'),
  )


@jax.jit
def encoder_forward(x, sp):
  B, T, C = x.shape
  x2d = x.reshape(B * T, C)                       # 2-D slab in / out
  kernel = functools.partial(
      encoder_kernel, batch=B, seq=T, n_head=N_HEAD,
      n_layers=sp['wqkv'].shape[0])
  out2d = pl.pallas_call(
      kernel,
      out_shape=jax.ShapeDtypeStruct((B * T, C), x.dtype),
      in_specs=[pl.BlockSpec(memory_space=pltpu.MemorySpace.VMEM)] * 10,
      out_specs=pl.BlockSpec(memory_space=pltpu.MemorySpace.VMEM),
  )(x2d, sp['g1'], sp['b1'], sp['wqkv'], sp['g2'], sp['b2'],
    sp['w1'], sp['bb1'], sp['w2'], sp['bb2'])
  return out2d.reshape(B, T, C)


# ----- pure-JAX f32 reference (same math, no Pallas, no bf16) ---------------
def encoder_block_ref(x, p):
  xn = _layernorm(x, p['g1'], p['b1'])
  B, T, C = x.shape
  hd = C // N_HEAD
  q = xn @ p['wq']; k = xn @ p['wk']; v = xn @ p['wv']
  heads = []
  for h in range(N_HEAD):
    sl = slice(h * hd, (h + 1) * hd)
    wei = jnp.einsum('btd,bsd->bts', q[:, :, sl], k[:, :, sl]) * (hd ** -0.5)
    wei = jax.nn.softmax(wei, axis=-1)
    heads.append(jnp.einsum('bts,bsd->btd', wei, v[:, :, sl]))
  x1 = xn + jnp.concatenate(heads, axis=-1)
  x2 = _layernorm(x1, p['g2'], p['b2'])
  ff = jnp.maximum(x2 @ p['w1'] + p['bb1'], 0.0) @ p['w2'] + p['bb2']
  return x2 + ff


def encoder_ref(x, params_list):
  for p in params_list:
    x = encoder_block_ref(x, p)
  return x


# ----- deterministic parameter init (PyTorch-style shapes) ------------------
def init_block_params(key):
  ks = jax.random.split(key, 8)

  def lin_w(k, fan_in, fan_out):
    bound = 1.0 / (fan_in ** 0.5)
    return jax.random.uniform(k, (fan_in, fan_out), jnp.float32, -bound, bound)

  def lin_b(k, fan_in, fan_out):
    bound = 1.0 / (fan_in ** 0.5)
    return jax.random.uniform(k, (1, fan_out), jnp.float32, -bound, bound)

  C = N_EMBD
  return dict(
      g1=jnp.ones((1, C), jnp.float32), b1=jnp.zeros((1, C), jnp.float32),
      wq=lin_w(ks[0], C, C), wk=lin_w(ks[1], C, C), wv=lin_w(ks[2], C, C),
      g2=jnp.ones((1, C), jnp.float32), b2=jnp.zeros((1, C), jnp.float32),
      w1=lin_w(ks[3], C, 4 * C), bb1=lin_b(ks[4], C, 4 * C),
      w2=lin_w(ks[5], 4 * C, C), bb2=lin_b(ks[6], 4 * C, C),
  )


if __name__ == "__main__":
  key = jax.random.PRNGKey(0)
  kx, kp = jax.random.split(key)

  B, T, C = 2, BLOCK_SIZE, N_EMBD                 # x: (2, 8, 64)
  x = jax.random.normal(kx, (B, T, C), jnp.float32)

  layer_keys = jax.random.split(kp, N_LAYERS)
  params_list = [init_block_params(k) for k in layer_keys]
  sp = stack_block_params(params_list)

  out = encoder_forward(x, sp)
  out = jax.block_until_ready(out)

  ref = encoder_ref(x, params_list)
  assert out.shape == (B, T, C)
  # Loose tolerance: kernel uses bf16 MXU inputs (f32 accumulation) + approx
  # reciprocal in softmax; reference is pure f32.
  assert jnp.allclose(out, ref, atol=5e-2, rtol=5e-2), (
      "mismatch vs JAX reference: max abs diff "
      f"{float(jnp.max(jnp.abs(out - ref)))}")

  print("KERNEL_OK")
</pallas_src>

<mosaic_0001>
module attributes {stable_mosaic.version = 11 : i64} {
  func.func @encoder_kernel(%arg0: memref<16x64xf32, #tpu.memory_space<vmem>>, %arg1: memref<2x1x64xf32, #tpu.memory_space<vmem>>, %arg2: memref<2x1x64xf32, #tpu.memory_space<vmem>>, %arg3: memref<2x64x192xbf16, #tpu.memory_space<vmem>>, %arg4: memref<2x1x64xf32, #tpu.memory_space<vmem>>, %arg5: memref<2x1x64xf32, #tpu.memory_space<vmem>>, %arg6: memref<2x64x256xbf16, #tpu.memory_space<vmem>>, %arg7: memref<2x1x256xf32, #tpu.memory_space<vmem>>, %arg8: memref<2x256x64xbf16, #tpu.memory_space<vmem>>, %arg9: memref<2x1x64xf32, #tpu.memory_space<vmem>>, %arg10: memref<16x64xf32, #tpu.memory_space<vmem>>) attributes {dimension_semantics = [], scalar_prefetch = 0 : i64, scratch_operands = 0 : i64, tpu.core_type = #tpu.core_type<tc>} {
    %c0 = arith.constant 0 : index
    %c0_0 = arith.constant 0 : index
    %0 = vector.load %arg0[%c0, %c0_0] : memref<16x64xf32, #tpu.memory_space<vmem>>, vector<16x64xf32>
    %c0_1 = arith.constant 0 : index
    %c0_2 = arith.constant 0 : index
    %c0_3 = arith.constant 0 : index
    %1 = vector.load %arg1[%c0_1, %c0_2, %c0_3] : memref<2x1x64xf32, #tpu.memory_space<vmem>>, vector<1x1x64xf32>
    %2 = vector.shape_cast %1 : vector<1x1x64xf32> to vector<1x64xf32>
    %c0_4 = arith.constant 0 : index
    %c0_5 = arith.constant 0 : index
    %c0_6 = arith.constant 0 : index
    %3 = vector.load %arg2[%c0_4, %c0_5, %c0_6] : memref<2x1x64xf32, #tpu.memory_space<vmem>>, vector<1x1x64xf32>
    %4 = vector.shape_cast %3 : vector<1x1x64xf32> to vector<1x64xf32>
    %cst = arith.constant dense<0.000000e+00> : vector<16xf32>
    %5 = vector.multi_reduction <add>, %0, %cst [1] : vector<16x64xf32> to vector<16xf32>
    %6 = vector.shape_cast %5 : vector<16xf32> to vector<16x1xf32>
    %cst_7 = arith.constant 6.400000e+01 : f32
    %7 = vector.broadcast %cst_7 : f32 to vector<16x1xf32>
    %8 = arith.divf %6, %7 : vector<16x1xf32>
    %9 = vector.broadcast %8 : vector<16x1xf32> to vector<16x64xf32>
    %10 = arith.subf %0, %9 : vector<16x64xf32>
    %11 = arith.mulf %10, %10 : vector<16x64xf32>
    %cst_8 = arith.constant dense<0.000000e+00> : vector<16xf32>
    %12 = vector.multi_reduction <add>, %11, %cst_8 [1] : vector<16x64xf32> to vector<16xf32>
    %13 = vector.shape_cast %12 : vector<16xf32> to vector<16x1xf32>
    %cst_9 = arith.constant 6.400000e+01 : f32
    %14 = vector.broadcast %cst_9 : f32 to vector<16x1xf32>
    %15 = arith.divf %13, %14 : vector<16x1xf32>
    %cst_10 = arith.constant 9.99999974E-6 : f32
    %16 = vector.broadcast %cst_10 : f32 to vector<16x1xf32>
    %17 = arith.addf %15, %16 : vector<16x1xf32>
    %18 = math.rsqrt %17 : vector<16x1xf32>
    %19 = vector.broadcast %18 : vector<16x1xf32> to vector<16x64xf32>
    %20 = arith.mulf %10, %19 : vector<16x64xf32>
    %21 = vector.broadcast %2 : vector<1x64xf32> to vector<16x64xf32>
    %22 = arith.mulf %20, %21 : vector<16x64xf32>
    %23 = vector.broadcast %4 : vector<1x64xf32> to vector<16x64xf32>
    %24 = arith.addf %22, %23 : vector<16x64xf32>
    %25 = arith.truncf %24 : vector<16x64xf32> to vector<16x64xbf16>
    %c0_11 = arith.constant 0 : index
    %c0_12 = arith.constant 0 : index
    %c0_13 = arith.constant 0 : index
    %26 = vector.load %arg3[%c0_11, %c0_12, %c0_13] : memref<2x64x192xbf16, #tpu.memory_space<vmem>>, vector<1x64x192xbf16>
    %27 = vector.shape_cast %26 : vector<1x64x192xbf16> to vector<64x192xbf16>
    %cst_14 = arith.constant dense<0.000000e+00> : vector<16x192xf32>
    %28 = tpu.matmul %25, %27, %cst_14 {dimension_numbers = #tpu.dot_dimension_numbers<[1], [0], [0], [1], [0, 0, 1, 1], [], []>} : vector<16x64xbf16>, vector<64x192xbf16>, vector<16x192xf32> -> vector<16x192xf32>
    %29 = vector.extract_strided_slice %28 {offsets = [0, 0], sizes = [16, 16], strides = [1, 1]} : vector<16x192xf32> to vector<16x16xf32>
    %30 = vector.extract_strided_slice %28 {offsets = [0, 16], sizes = [16, 16], strides = [1, 1]} : vector<16x192xf32> to vector<16x16xf32>
    %31 = vector.extract_strided_slice %28 {offsets = [0, 32], sizes = [16, 16], strides = [1, 1]} : vector<16x192xf32> to vector<16x16xf32>
    %32 = vector.extract_strided_slice %28 {offsets = [0, 48], sizes = [16, 16], strides = [1, 1]} : vector<16x192xf32> to vector<16x16xf32>
    %33 = vector.shape_cast %29 : vector<16x16xf32> to vector<1x16x16xf32>
    %34 = vector.shape_cast %30 : vector<16x16xf32> to vector<1x16x16xf32>
    %35 = vector.shape_cast %31 : vector<16x16xf32> to vector<1x16x16xf32>
    %36 = vector.shape_cast %32 : vector<16x16xf32> to vector<1x16x16xf32>
    %37 = tpu.concatenate %33, %34, %35, %36 in 0 : vector<1x16x16xf32>, vector<1x16x16xf32>, vector<1x16x16xf32>, vector<1x16x16xf32> -> vector<4x16x16xf32>
    %38 = vector.shape_cast %37 : vector<4x16x16xf32> to vector<4x2x8x16xf32>
    %39 = vector.shape_cast %38 : vector<4x2x8x16xf32> to vector<8x8x16xf32>
    %40 = vector.extract_strided_slice %28 {offsets = [0, 64], sizes = [16, 16], strides = [1, 1]} : vector<16x192xf32> to vector<16x16xf32>
    %41 = vector.extract_strided_slice %28 {offsets = [0, 80], sizes = [16, 16], strides = [1, 1]} : vector<16x192xf32> to vector<16x16xf32>
    %42 = vector.extract_strided_slice %28 {offsets = [0, 96], sizes = [16, 16], strides = [1, 1]} : vector<16x192xf32> to vector<16x16xf32>
    %43 = vector.extract_strided_slice %28 {offsets = [0, 112], sizes = [16, 16], strides = [1, 1]} : vector<16x192xf32> to vector<16x16xf32>
    %44 = vector.shape_cast %40 : vector<16x16xf32> to vector<1x16x16xf32>
    %45 = vector.shape_cast %41 : vector<16x16xf32> to vector<1x16x16xf32>
    %46 = vector.shape_cast %42 : vector<16x16xf32> to vector<1x16x16xf32>
    %47 = vector.shape_cast %43 : vector<16x16xf32> to vector<1x16x16xf32>
    %48 = tpu.concatenate %44, %45, %46, %47 in 0 : vector<1x16x16xf32>, vector<1x16x16xf32>, vector<1x16x16xf32>, vector<1x16x16xf32> -> vector<4x16x16xf32>
    %49 = vector.shape_cast %48 : vector<4x16x16xf32> to vector<4x2x8x16xf32>
    %50 = vector.shape_cast %49 : vector<4x2x8x16xf32> to vector<8x8x16xf32>
    %51 = vector.extract_strided_slice %28 {offsets = [0, 128], sizes = [16, 16], strides = [1, 1]} : vector<16x192xf32> to vector<16x16xf32>
    %52 = vector.extract_strided_slice %28 {offsets = [0, 144], sizes = [16, 16], strides = [1, 1]} : vector<16x192xf32> to vector<16x16xf32>
    %53 = vector.extract_strided_slice %28 {offsets = [0, 160], sizes = [16, 16], strides = [1, 1]} : vector<16x192xf32> to vector<16x16xf32>
    %54 = vector.extract_strided_slice %28 {offsets = [0, 176], sizes = [16, 16], strides = [1, 1]} : vector<16x192xf32> to vector<16x16xf32>
    %55 = vector.shape_cast %51 : vector<16x16xf32> to vector<1x16x16xf32>
    %56 = vector.shape_cast %52 : vector<16x16xf32> to vector<1x16x16xf32>
    %57 = vector.shape_cast %53 : vector<16x16xf32> to vector<1x16x16xf32>
    %58 = vector.shape_cast %54 : vector<16x16xf32> to vector<1x16x16xf32>
    %59 = tpu.concatenate %55, %56, %57, %58 in 0 : vector<1x16x16xf32>, vector<1x16x16xf32>, vector<1x16x16xf32>, vector<1x16x16xf32> -> vector<4x16x16xf32>
    %60 = vector.shape_cast %59 : vector<4x16x16xf32> to vector<4x2x8x16xf32>
    %61 = vector.shape_cast %60 : vector<4x2x8x16xf32> to vector<8x8x16xf32>
    %62 = arith.truncf %39 : vector<8x8x16xf32> to vector<8x8x16xbf16>
    %63 = arith.truncf %50 : vector<8x8x16xf32> to vector<8x8x16xbf16>
    "tpu.trace_start"() <{level = 10 : i32, message = "btd,bsd->bts"}> : () -> ()
    %cst_15 = arith.constant dense<0.000000e+00> : vector<8x8x8xf32>
    %64 = tpu.matmul %62, %63, %cst_15 {dimension_numbers = #tpu.dot_dimension_numbers<[2], [2], [1], [1], [0, 0, 0, 1, 1, 1], [0], [0]>} : vector<8x8x16xbf16>, vector<8x8x16xbf16>, vector<8x8x8xf32> -> vector<8x8x8xf32>
    "tpu.trace_stop"() : () -> ()
    %cst_16 = arith.constant 2.500000e-01 : f32
    %65 = vector.broadcast %cst_16 : f32 to vector<8x8x8xf32>
    %66 = arith.mulf %64, %65 : vector<8x8x8xf32>
    %cst_17 = arith.constant dense<0xFF800000> : vector<8x8xf32>
    %67 = vector.multi_reduction <maximumf>, %66, %cst_17 [2] : vector<8x8x8xf32> to vector<8x8xf32>
    %68 = vector.shape_cast %67 : vector<8x8xf32> to vector<8x8x1xf32>
    %69 = vector.broadcast %68 : vector<8x8x1xf32> to vector<8x8x8xf32>
    %70 = arith.subf %66, %69 : vector<8x8x8xf32>
    %71 = math.exp %70 : vector<8x8x8xf32>
    %cst_18 = arith.constant dense<0.000000e+00> : vector<8x8xf32>
    %72 = vector.multi_reduction <add>, %71, %cst_18 [2] : vector<8x8x8xf32> to vector<8x8xf32>
    %73 = vector.shape_cast %72 : vector<8x8xf32> to vector<8x8x1xf32>
    %74 = tpu.reciprocal %73 {approx = true} : vector<8x8x1xf32> -> vector<8x8x1xf32>
    %75 = vector.broadcast %74 : vector<8x8x1xf32> to vector<8x8x8xf32>
    %76 = arith.mulf %71, %75 : vector<8x8x8xf32>
    %77 = arith.truncf %76 : vector<8x8x8xf32> to vector<8x8x8xbf16>
    %78 = arith.truncf %61 : vector<8x8x16xf32> to vector<8x8x16xbf16>
    "tpu.trace_start"() <{level = 10 : i32, message = "bts,bsd->btd"}> : () -> ()
    %cst_19 = arith.constant dense<0.000000e+00> : vector<8x8x16xf32>
    %79 = tpu.matmul %77, %78, %cst_19 {dimension_numbers = #tpu.dot_dimension_numbers<[2], [1], [1], [2], [0, 0, 0, 1, 1, 2], [0], [0]>} : vector<8x8x8xbf16>, vector<8x8x16xbf16>, vector<8x8x16xf32> -> vector<8x8x16xf32>
    "tpu.trace_stop"() : () -> ()
    %80 = vector.shape_cast %79 : vector<8x8x16xf32> to vector<4x2x8x16xf32>
    %81 = vector.extract_strided_slice %80 {offsets = [0, 0, 0, 0], sizes = [1, 2, 8, 16], strides = [1, 1, 1, 1]} : vector<4x2x8x16xf32> to vector<1x2x8x16xf32>
    %82 = vector.shape_cast %81 : vector<1x2x8x16xf32> to vector<2x8x16xf32>
    %83 = vector.extract_strided_slice %80 {offsets = [1, 0, 0, 0], sizes = [1, 2, 8, 16], strides = [1, 1, 1, 1]} : vector<4x2x8x16xf32> to vector<1x2x8x16xf32>
    %84 = vector.shape_cast %83 : vector<1x2x8x16xf32> to vector<2x8x16xf32>
    %85 = vector.extract_strided_slice %80 {offsets = [2, 0, 0, 0], sizes = [1, 2, 8, 16], strides = [1, 1, 1, 1]} : vector<4x2x8x16xf32> to vector<1x2x8x16xf32>
    %86 = vector.shape_cast %85 : vector<1x2x8x16xf32> to vector<2x8x16xf32>
    %87 = vector.extract_strided_slice %80 {offsets = [3, 0, 0, 0], sizes = [1, 2, 8, 16], strides = [1, 1, 1, 1]} : vector<4x2x8x16xf32> to vector<1x2x8x16xf32>
    %88 = vector.shape_cast %87 : vector<1x2x8x16xf32> to vector<2x8x16xf32>
    %89 = tpu.concatenate %82, %84, %86, %88 in 2 : vector<2x8x16xf32>, vector<2x8x16xf32>, vector<2x8x16xf32>, vector<2x8x16xf32> -> vector<2x8x64xf32>
    %90 = vector.shape_cast %89 : vector<2x8x64xf32> to vector<16x64xf32>
    %91 = arith.addf %24, %90 : vector<16x64xf32>
    %c0_20 = arith.constant 0 : index
    %c0_21 = arith.constant 0 : index
    %c0_22 = arith.constant 0 : index
    %92 = vector.load %arg4[%c0_20, %c0_21, %c0_22] : memref<2x1x64xf32, #tpu.memory_space<vmem>>, vector<1x1x64xf32>
    %93 = vector.shape_cast %92 : vector<1x1x64xf32> to vector<1x64xf32>
    %c0_23 = arith.constant 0 : index
    %c0_24 = arith.constant 0 : index
    %c0_25 = arith.constant 0 : index
    %94 = vector.load %arg5[%c0_23, %c0_24, %c0_25] : memref<2x1x64xf32, #tpu.memory_space<vmem>>, vector<1x1x64xf32>
    %95 = vector.shape_cast %94 : vector<1x1x64xf32> to vector<1x64xf32>
    %cst_26 = arith.constant dense<0.000000e+00> : vector<16xf32>
    %96 = vector.multi_reduction <add>, %91, %cst_26 [1] : vector<16x64xf32> to vector<16xf32>
    %97 = vector.shape_cast %96 : vector<16xf32> to vector<16x1xf32>
    %cst_27 = arith.constant 6.400000e+01 : f32
    %98 = vector.broadcast %cst_27 : f32 to vector<16x1xf32>
    %99 = arith.divf %97, %98 : vector<16x1xf32>
    %100 = vector.broadcast %99 : vector<16x1xf32> to vector<16x64xf32>
    %101 = arith.subf %91, %100 : vector<16x64xf32>
    %102 = arith.mulf %101, %101 : vector<16x64xf32>
    %cst_28 = arith.constant dense<0.000000e+00> : vector<16xf32>
    %103 = vector.multi_reduction <add>, %102, %cst_28 [1] : vector<16x64xf32> to vector<16xf32>
    %104 = vector.shape_cast %103 : vector<16xf32> to vector<16x1xf32>
    %cst_29 = arith.constant 6.400000e+01 : f32
    %105 = vector.broadcast %cst_29 : f32 to vector<16x1xf32>
    %106 = arith.divf %104, %105 : vector<16x1xf32>
    %cst_30 = arith.constant 9.99999974E-6 : f32
    %107 = vector.broadcast %cst_30 : f32 to vector<16x1xf32>
    %108 = arith.addf %106, %107 : vector<16x1xf32>
    %109 = math.rsqrt %108 : vector<16x1xf32>
    %110 = vector.broadcast %109 : vector<16x1xf32> to vector<16x64xf32>
    %111 = arith.mulf %101, %110 : vector<16x64xf32>
    %112 = vector.broadcast %93 : vector<1x64xf32> to vector<16x64xf32>
    %113 = arith.mulf %111, %112 : vector<16x64xf32>
    %114 = vector.broadcast %95 : vector<1x64xf32> to vector<16x64xf32>
    %115 = arith.addf %113, %114 : vector<16x64xf32>
    %116 = arith.truncf %115 : vector<16x64xf32> to vector<16x64xbf16>
    %c0_31 = arith.constant 0 : index
    %c0_32 = arith.constant 0 : index
    %c0_33 = arith.constant 0 : index
    %117 = vector.load %arg6[%c0_31, %c0_32, %c0_33] : memref<2x64x256xbf16, #tpu.memory_space<vmem>>, vector<1x64x256xbf16>
    %118 = vector.shape_cast %117 : vector<1x64x256xbf16> to vector<64x256xbf16>
    %cst_34 = arith.constant dense<0.000000e+00> : vector<16x256xf32>
    %119 = tpu.matmul %116, %118, %cst_34 {dimension_numbers = #tpu.dot_dimension_numbers<[1], [0], [0], [1], [0, 0, 1, 1], [], []>} : vector<16x64xbf16>, vector<64x256xbf16>, vector<16x256xf32> -> vector<16x256xf32>
    %c0_35 = arith.constant 0 : index
    %c0_36 = arith.constant 0 : index
    %c0_37 = arith.constant 0 : index
    %120 = vector.load %arg7[%c0_35, %c0_36, %c0_37] : memref<2x1x256xf32, #tpu.memory_space<vmem>>, vector<1x1x256xf32>
    %121 = vector.shape_cast %120 : vector<1x1x256xf32> to vector<1x256xf32>
    %122 = vector.broadcast %121 : vector<1x256xf32> to vector<16x256xf32>
    %123 = arith.addf %119, %122 : vector<16x256xf32>
    %cst_38 = arith.constant 0.000000e+00 : f32
    %124 = vector.broadcast %cst_38 : f32 to vector<16x256xf32>
    %125 = arith.maximumf %123, %124 : vector<16x256xf32>
    %126 = arith.truncf %125 : vector<16x256xf32> to vector<16x256xbf16>
    %c0_39 = arith.constant 0 : index
    %c0_40 = arith.constant 0 : index
    %c0_41 = arith.constant 0 : index
    %127 = vector.load %arg8[%c0_39, %c0_40, %c0_41] : memref<2x256x64xbf16, #tpu.memory_space<vmem>>, vector<1x256x64xbf16>
    %128 = vector.shape_cast %127 : vector<1x256x64xbf16> to vector<256x64xbf16>
    %cst_42 = arith.constant dense<0.000000e+00> : vector<16x64xf32>
    %129 = tpu.matmul %126, %128, %cst_42 {dimension_numbers = #tpu.dot_dimension_numbers<[1], [0], [0], [1], [0, 0, 1, 1], [], []>} : vector<16x256xbf16>, vector<256x64xbf16>, vector<16x64xf32> -> vector<16x64xf32>
    %c0_43 = arith.constant 0 : index
    %c0_44 = arith.constant 0 : index
    %c0_45 = arith.constant 0 : index
    %130 = vector.load %arg9[%c0_43, %c0_44, %c0_45] : memref<2x1x64xf32, #tpu.memory_space<vmem>>, vector<1x1x64xf32>
    %131 = vector.shape_cast %130 : vector<1x1x64xf32> to vector<1x64xf32>
    %132 = vector.broadcast %131 : vector<1x64xf32> to vector<16x64xf32>
    %133 = arith.addf %129, %132 : vector<16x64xf32>
    %134 = arith.addf %115, %133 : vector<16x64xf32>
    %c1 = arith.constant 1 : index
    %c0_46 = arith.constant 0 : index
    %c0_47 = arith.constant 0 : index
    %135 = vector.load %arg1[%c1, %c0_46, %c0_47] : memref<2x1x64xf32, #tpu.memory_space<vmem>>, vector<1x1x64xf32>
    %136 = vector.shape_cast %135 : vector<1x1x64xf32> to vector<1x64xf32>
    %c1_48 = arith.constant 1 : index
    %c0_49 = arith.constant 0 : index
    %c0_50 = arith.constant 0 : index
    %137 = vector.load %arg2[%c1_48, %c0_49, %c0_50] : memref<2x1x64xf32, #tpu.memory_space<vmem>>, vector<1x1x64xf32>
    %138 = vector.shape_cast %137 : vector<1x1x64xf32> to vector<1x64xf32>
    %cst_51 = arith.constant dense<0.000000e+00> : vector<16xf32>
    %139 = vector.multi_reduction <add>, %134, %cst_51 [1] : vector<16x64xf32> to vector<16xf32>
    %140 = vector.shape_cast %139 : vector<16xf32> to vector<16x1xf32>
    %cst_52 = arith.constant 6.400000e+01 : f32
    %141 = vector.broadcast %cst_52 : f32 to vector<16x1xf32>
    %142 = arith.divf %140, %141 : vector<16x1xf32>
    %143 = vector.broadcast %142 : vector<16x1xf32> to vector<16x64xf32>
    %144 = arith.subf %134, %143 : vector<16x64xf32>
    %145 = arith.mulf %144, %144 : vector<16x64xf32>
    %cst_53 = arith.constant dense<0.000000e+00> : vector<16xf32>
    %146 = vector.multi_reduction <add>, %145, %cst_53 [1] : vector<16x64xf32> to vector<16xf32>
    %147 = vector.shape_cast %146 : vector<16xf32> to vector<16x1xf32>
    %cst_54 = arith.constant 6.400000e+01 : f32
    %148 = vector.broadcast %cst_54 : f32 to vector<16x1xf32>
    %149 = arith.divf %147, %148 : vector<16x1xf32>
    %cst_55 = arith.constant 9.99999974E-6 : f32
    %150 = vector.broadcast %cst_55 : f32 to vector<16x1xf32>
    %151 = arith.addf %149, %150 : vector<16x1xf32>
    %152 = math.rsqrt %151 : vector<16x1xf32>
    %153 = vector.broadcast %152 : vector<16x1xf32> to vector<16x64xf32>
    %154 = arith.mulf %144, %153 : vector<16x64xf32>
    %155 = vector.broadcast %136 : vector<1x64xf32> to vector<16x64xf32>
    %156 = arith.mulf %154, %155 : vector<16x64xf32>
    %157 = vector.broadcast %138 : vector<1x64xf32> to vector<16x64xf32>
    %158 = arith.addf %156, %157 : vector<16x64xf32>
    %159 = arith.truncf %158 : vector<16x64xf32> to vector<16x64xbf16>
    %c1_56 = arith.constant 1 : index
    %c0_57 = arith.constant 0 : index
    %c0_58 = arith.constant 0 : index
    %160 = vector.load %arg3[%c1_56, %c0_57, %c0_58] : memref<2x64x192xbf16, #tpu.memory_space<vmem>>, vector<1x64x192xbf16>
    %161 = vector.shape_cast %160 : vector<1x64x192xbf16> to vector<64x192xbf16>
    %cst_59 = arith.constant dense<0.000000e+00> : vector<16x192xf32>
    %162 = tpu.matmul %159, %161, %cst_59 {dimension_numbers = #tpu.dot_dimension_numbers<[1], [0], [0], [1], [0, 0, 1, 1], [], []>} : vector<16x64xbf16>, vector<64x192xbf16>, vector<16x192xf32> -> vector<16x192xf32>
    %163 = vector.extract_strided_slice %162 {offsets = [0, 0], sizes = [16, 16], strides = [1, 1]} : vector<16x192xf32> to vector<16x16xf32>
    %164 = vector.extract_strided_slice %162 {offsets = [0, 16], sizes = [16, 16], strides = [1, 1]} : vector<16x192xf32> to vector<16x16xf32>
    %165 = vector.extract_strided_slice %162 {offsets = [0, 32], sizes = [16, 16], strides = [1, 1]} : vector<16x192xf32> to vector<16x16xf32>
    %166 = vector.extract_strided_slice %162 {offsets = [0, 48], sizes = [16, 16], strides = [1, 1]} : vector<16x192xf32> to vector<16x16xf32>
    %167 = vector.shape_cast %163 : vector<16x16xf32> to vector<1x16x16xf32>
    %168 = vector.shape_cast %164 : vector<16x16xf32> to vector<1x16x16xf32>
    %169 = vector.shape_cast %165 : vector<16x16xf32> to vector<1x16x16xf32>
    %170 = vector.shape_cast %166 : vector<16x16xf32> to vector<1x16x16xf32>
    %171 = tpu.concatenate %167, %168, %169, %170 in 0 : vector<1x16x16xf32>, vector<1x16x16xf32>, vector<1x16x16xf32>, vector<1x16x16xf32> -> vector<4x16x16xf32>
    %172 = vector.shape_cast %171 : vector<4x16x16xf32> to vector<4x2x8x16xf32>
    %173 = vector.shape_cast %172 : vector<4x2x8x16xf32> to vector<8x8x16xf32>
    %174 = vector.extract_strided_slice %162 {offsets = [0, 64], sizes = [16, 16], strides = [1, 1]} : vector<16x192xf32> to vector<16x16xf32>
    %175 = vector.extract_strided_slice %162 {offsets = [0, 80], sizes = [16, 16], strides = [1, 1]} : vector<16x192xf32> to vector<16x16xf32>
    %176 = vector.extract_strided_slice %162 {offsets = [0, 96], sizes = [16, 16], strides = [1, 1]} : vector<16x192xf32> to vector<16x16xf32>
    %177 = vector.extract_strided_slice %162 {offsets = [0, 112], sizes = [16, 16], strides = [1, 1]} : vector<16x192xf32> to vector<16x16xf32>
    %178 = vector.shape_cast %174 : vector<16x16xf32> to vector<1x16x16xf32>
    %179 = vector.shape_cast %175 : vector<16x16xf32> to vector<1x16x16xf32>
    %180 = vector.shape_cast %176 : vector<16x16xf32> to vector<1x16x16xf32>
    %181 = vector.shape_cast %177 : vector<16x16xf32> to vector<1x16x16xf32>
    %182 = tpu.concatenate %178, %179, %180, %181 in 0 : vector<1x16x16xf32>, vector<1x16x16xf32>, vector<1x16x16xf32>, vector<1x16x16xf32> -> vector<4x16x16xf32>
    %183 = vector.shape_cast %182 : vector<4x16x16xf32> to vector<4x2x8x16xf32>
    %184 = vector.shape_cast %183 : vector<4x2x8x16xf32> to vector<8x8x16xf32>
    %185 = vector.extract_strided_slice %162 {offsets = [0, 128], sizes = [16, 16], strides = [1, 1]} : vector<16x192xf32> to vector<16x16xf32>
    %186 = vector.extract_strided_slice %162 {offsets = [0, 144], sizes = [16, 16], strides = [1, 1]} : vector<16x192xf32> to vector<16x16xf32>
    %187 = vector.extract_strided_slice %162 {offsets = [0, 160], sizes = [16, 16], strides = [1, 1]} : vector<16x192xf32> to vector<16x16xf32>
    %188 = vector.extract_strided_slice %162 {offsets = [0, 176], sizes = [16, 16], strides = [1, 1]} : vector<16x192xf32> to vector<16x16xf32>
    %189 = vector.shape_cast %185 : vector<16x16xf32> to vector<1x16x16xf32>
    %190 = vector.shape_cast %186 : vector<16x16xf32> to vector<1x16x16xf32>
    %191 = vector.shape_cast %187 : vector<16x16xf32> to vector<1x16x16xf32>
    %192 = vector.shape_cast %188 : vector<16x16xf32> to vector<1x16x16xf32>
    %193 = tpu.concatenate %189, %190, %191, %192 in 0 : vector<1x16x16xf32>, vector<1x16x16xf32>, vector<1x16x16xf32>, vector<1x16x16xf32> -> vector<4x16x16xf32>
    %194 = vector.shape_cast %193 : vector<4x16x16xf32> to vector<4x2x8x16xf32>
    %195 = vector.shape_cast %194 : vector<4x2x8x16xf32> to vector<8x8x16xf32>
    %196 = arith.truncf %173 : vector<8x8x16xf32> to vector<8x8x16xbf16>
    %197 = arith.truncf %184 : vector<8x8x16xf32> to vector<8x8x16xbf16>
    "tpu.trace_start"() <{level = 10 : i32, message = "btd,bsd->bts"}> : () -> ()
    %cst_60 = arith.constant dense<0.000000e+00> : vector<8x8x8xf32>
    %198 = tpu.matmul %196, %197, %cst_60 {dimension_numbers = #tpu.dot_dimension_numbers<[2], [2], [1], [1], [0, 0, 0, 1, 1, 1], [0], [0]>} : vector<8x8x16xbf16>, vector<8x8x16xbf16>, vector<8x8x8xf32> -> vector<8x8x8xf32>
    "tpu.trace_stop"() : () -> ()
    %cst_61 = arith.constant 2.500000e-01 : f32
    %199 = vector.broadcast %cst_61 : f32 to vector<8x8x8xf32>
    %200 = arith.mulf %198, %199 : vector<8x8x8xf32>
    %cst_62 = arith.constant dense<0xFF800000> : vector<8x8xf32>
    %201 = vector.multi_reduction <maximumf>, %200, %cst_62 [2] : vector<8x8x8xf32> to vector<8x8xf32>
    %202 = vector.shape_cast %201 : vector<8x8xf32> to vector<8x8x1xf32>
    %203 = vector.broadcast %202 : vector<8x8x1xf32> to vector<8x8x8xf32>
    %204 = arith.subf %200, %203 : vector<8x8x8xf32>
    %205 = math.exp %204 : vector<8x8x8xf32>
    %cst_63 = arith.constant dense<0.000000e+00> : vector<8x8xf32>
    %206 = vector.multi_reduction <add>, %205, %cst_63 [2] : vector<8x8x8xf32> to vector<8x8xf32>
    %207 = vector.shape_cast %206 : vector<8x8xf32> to vector<8x8x1xf32>
    %208 = tpu.reciprocal %207 {approx = true} : vector<8x8x1xf32> -> vector<8x8x1xf32>
    %209 = vector.broadcast %208 : vector<8x8x1xf32> to vector<8x8x8xf32>
    %210 = arith.mulf %205, %209 : vector<8x8x8xf32>
    %211 = arith.truncf %210 : vector<8x8x8xf32> to vector<8x8x8xbf16>
    %212 = arith.truncf %195 : vector<8x8x16xf32> to vector<8x8x16xbf16>
    "tpu.trace_start"() <{level = 10 : i32, message = "bts,bsd->btd"}> : () -> ()
    %cst_64 = arith.constant dense<0.000000e+00> : vector<8x8x16xf32>
    %213 = tpu.matmul %211, %212, %cst_64 {dimension_numbers = #tpu.dot_dimension_numbers<[2], [1], [1], [2], [0, 0, 0, 1, 1, 2], [0], [0]>} : vector<8x8x8xbf16>, vector<8x8x16xbf16>, vector<8x8x16xf32> -> vector<8x8x16xf32>
    "tpu.trace_stop"() : () -> ()
    %214 = vector.shape_cast %213 : vector<8x8x16xf32> to vector<4x2x8x16xf32>
    %215 = vector.extract_strided_slice %214 {offsets = [0, 0, 0, 0], sizes = [1, 2, 8, 16], strides = [1, 1, 1, 1]} : vector<4x2x8x16xf32> to vector<1x2x8x16xf32>
    %216 = vector.shape_cast %215 : vector<1x2x8x16xf32> to vector<2x8x16xf32>
    %217 = vector.extract_strided_slice %214 {offsets = [1, 0, 0, 0], sizes = [1, 2, 8, 16], strides = [1, 1, 1, 1]} : vector<4x2x8x16xf32> to vector<1x2x8x16xf32>
    %218 = vector.shape_cast %217 : vector<1x2x8x16xf32> to vector<2x8x16xf32>
    %219 = vector.extract_strided_slice %214 {offsets = [2, 0, 0, 0], sizes = [1, 2, 8, 16], strides = [1, 1, 1, 1]} : vector<4x2x8x16xf32> to vector<1x2x8x16xf32>
    %220 = vector.shape_cast %219 : vector<1x2x8x16xf32> to vector<2x8x16xf32>
    %221 = vector.extract_strided_slice %214 {offsets = [3, 0, 0, 0], sizes = [1, 2, 8, 16], strides = [1, 1, 1, 1]} : vector<4x2x8x16xf32> to vector<1x2x8x16xf32>
    %222 = vector.shape_cast %221 : vector<1x2x8x16xf32> to vector<2x8x16xf32>
    %223 = tpu.concatenate %216, %218, %220, %222 in 2 : vector<2x8x16xf32>, vector<2x8x16xf32>, vector<2x8x16xf32>, vector<2x8x16xf32> -> vector<2x8x64xf32>
    %224 = vector.shape_cast %223 : vector<2x8x64xf32> to vector<16x64xf32>
    %225 = arith.addf %158, %224 : vector<16x64xf32>
    %c1_65 = arith.constant 1 : index
    %c0_66 = arith.constant 0 : index
    %c0_67 = arith.constant 0 : index
    %226 = vector.load %arg4[%c1_65, %c0_66, %c0_67] : memref<2x1x64xf32, #tpu.memory_space<vmem>>, vector<1x1x64xf32>
    %227 = vector.shape_cast %226 : vector<1x1x64xf32> to vector<1x64xf32>
    %c1_68 = arith.constant 1 : index
    %c0_69 = arith.constant 0 : index
    %c0_70 = arith.constant 0 : index
    %228 = vector.load %arg5[%c1_68, %c0_69, %c0_70] : memref<2x1x64xf32, #tpu.memory_space<vmem>>, vector<1x1x64xf32>
    %229 = vector.shape_cast %228 : vector<1x1x64xf32> to vector<1x64xf32>
    %cst_71 = arith.constant dense<0.000000e+00> : vector<16xf32>
    %230 = vector.multi_reduction <add>, %225, %cst_71 [1] : vector<16x64xf32> to vector<16xf32>
    %231 = vector.shape_cast %230 : vector<16xf32> to vector<16x1xf32>
    %cst_72 = arith.constant 6.400000e+01 : f32
    %232 = vector.broadcast %cst_72 : f32 to vector<16x1xf32>
    %233 = arith.divf %231, %232 : vector<16x1xf32>
    %234 = vector.broadcast %233 : vector<16x1xf32> to vector<16x64xf32>
    %235 = arith.subf %225, %234 : vector<16x64xf32>
    %236 = arith.mulf %235, %235 : vector<16x64xf32>
    %cst_73 = arith.constant dense<0.000000e+00> : vector<16xf32>
    %237 = vector.multi_reduction <add>, %236, %cst_73 [1] : vector<16x64xf32> to vector<16xf32>
    %238 = vector.shape_cast %237 : vector<16xf32> to vector<16x1xf32>
    %cst_74 = arith.constant 6.400000e+01 : f32
    %239 = vector.broadcast %cst_74 : f32 to vector<16x1xf32>
    %240 = arith.divf %238, %239 : vector<16x1xf32>
    %cst_75 = arith.constant 9.99999974E-6 : f32
    %241 = vector.broadcast %cst_75 : f32 to vector<16x1xf32>
    %242 = arith.addf %240, %241 : vector<16x1xf32>
    %243 = math.rsqrt %242 : vector<16x1xf32>
    %244 = vector.broadcast %243 : vector<16x1xf32> to vector<16x64xf32>
    %245 = arith.mulf %235, %244 : vector<16x64xf32>
    %246 = vector.broadcast %227 : vector<1x64xf32> to vector<16x64xf32>
    %247 = arith.mulf %245, %246 : vector<16x64xf32>
    %248 = vector.broadcast %229 : vector<1x64xf32> to vector<16x64xf32>
    %249 = arith.addf %247, %248 : vector<16x64xf32>
    %250 = arith.truncf %249 : vector<16x64xf32> to vector<16x64xbf16>
    %c1_76 = arith.constant 1 : index
    %c0_77 = arith.constant 0 : index
    %c0_78 = arith.constant 0 : index
    %251 = vector.load %arg6[%c1_76, %c0_77, %c0_78] : memref<2x64x256xbf16, #tpu.memory_space<vmem>>, vector<1x64x256xbf16>
    %252 = vector.shape_cast %251 : vector<1x64x256xbf16> to vector<64x256xbf16>
    %cst_79 = arith.constant dense<0.000000e+00> : vector<16x256xf32>
    %253 = tpu.matmul %250, %252, %cst_79 {dimension_numbers = #tpu.dot_dimension_numbers<[1], [0], [0], [1], [0, 0, 1, 1], [], []>} : vector<16x64xbf16>, vector<64x256xbf16>, vector<16x256xf32> -> vector<16x256xf32>
    %c1_80 = arith.constant 1 : index
    %c0_81 = arith.constant 0 : index
    %c0_82 = arith.constant 0 : index
    %254 = vector.load %arg7[%c1_80, %c0_81, %c0_82] : memref<2x1x256xf32, #tpu.memory_space<vmem>>, vector<1x1x256xf32>
    %255 = vector.shape_cast %254 : vector<1x1x256xf32> to vector<1x256xf32>
    %256 = vector.broadcast %255 : vector<1x256xf32> to vector<16x256xf32>
    %257 = arith.addf %253, %256 : vector<16x256xf32>
    %cst_83 = arith.constant 0.000000e+00 : f32
    %258 = vector.broadcast %cst_83 : f32 to vector<16x256xf32>
    %259 = arith.maximumf %257, %258 : vector<16x256xf32>
    %260 = arith.truncf %259 : vector<16x256xf32> to vector<16x256xbf16>
    %c1_84 = arith.constant 1 : index
    %c0_85 = arith.constant 0 : index
    %c0_86 = arith.constant 0 : index
    %261 = vector.load %arg8[%c1_84, %c0_85, %c0_86] : memref<2x256x64xbf16, #tpu.memory_space<vmem>>, vector<1x256x64xbf16>
    %262 = vector.shape_cast %261 : vector<1x256x64xbf16> to vector<256x64xbf16>
    %cst_87 = arith.constant dense<0.000000e+00> : vector<16x64xf32>
    %263 = tpu.matmul %260, %262, %cst_87 {dimension_numbers = #tpu.dot_dimension_numbers<[1], [0], [0], [1], [0, 0, 1, 1], [], []>} : vector<16x256xbf16>, vector<256x64xbf16>, vector<16x64xf32> -> vector<16x64xf32>
    %c1_88 = arith.constant 1 : index
    %c0_89 = arith.constant 0 : index
    %c0_90 = arith.constant 0 : index
    %264 = vector.load %arg9[%c1_88, %c0_89, %c0_90] : memref<2x1x64xf32, #tpu.memory_space<vmem>>, vector<1x1x64xf32>
    %265 = vector.shape_cast %264 : vector<1x1x64xf32> to vector<1x64xf32>
    %266 = vector.broadcast %265 : vector<1x64xf32> to vector<16x64xf32>
    %267 = arith.addf %263, %266 : vector<16x64xf32>
    %268 = arith.addf %249, %267 : vector<16x64xf32>
    %c0_91 = arith.constant 0 : index
    %c0_92 = arith.constant 0 : index
    %269 = vector.load %arg10[%c0_91, %c0_92] : memref<16x64xf32, #tpu.memory_space<vmem>>, vector<16x64xf32>
    tpu.vector_store %arg10[%c0_91, %c0_92], %268 {strides = array<i32>} : memref<16x64xf32, #tpu.memory_space<vmem>>, vector<16x64xf32>,
    return
  }
}

</mosaic_0001>

<bundles_post_ra>
// kernel: encoder_forward.1
= control target key start
LH: loop header
LB: loop body
LE: loop exit
PB: predicated region body
PF: predicated region fallthrough
CT: control target
= control target key end

     0   :  { %vm41_vm0 = vcmask 523264   ;;  %s4328_s0 = inlined_call_operand.vmem [shape: f32[16,64], index: 0, kind: input, shape index: {}]   ;;  %s4329_s1 = inlined_call_operand.vmem [shape: f32[2,1,64], index: 1, kind: input, shape index: {}]   ;;  %s4330_s2 = inlined_call_operand.vmem [shape: f32[2,1,64], index: 2, kind: input, shape index: {}]   ;;  %s4331_s3 = inlined_call_operand.vmem [shape: bf16[2,64,192], index: 3, kind: input, shape index: {}]   ;;  %s4332_s4 = inlined_call_operand.vmem [shape: f32[2,1,64], index: 4, kind: input, shape index: {}]   ;;  %s4333_s5 = inlined_call_operand.vmem [shape: f32[2,1,64], index: 5, kind: input, shape index: {}]   ;;  %s4334_s6 = inlined_call_operand.vmem [shape: bf16[2,64,256], index: 6, kind: input, shape index: {}]   ;;  %s4335_s7 = inlined_call_operand.vmem [shape: f32[2,1,256], index: 7, kind: input, shape index: {}]   ;;  %s4336_s8 = inlined_call_operand.vmem [shape: bf16[2,256,64], index: 8, kind: input, shape index: {}]   ;;  %s4337_s9 = inlined_call_operand.vmem [shape: f32[2,1,64], index: 9, kind: input, shape index: {}]   ;;  %s4338_s10 = inlined_call_operand.hbm [shape: f32[16,64], index: 10, kind: output, shape index: {}]  }
   0x1   :  { %v37_v0 = vld [vmem:[%s4328_s0] sm:$0xff]  ;;  %v38_v1 = vld [vmem:[%s4328_s0 + $0x8] sm:$0xff] }
   0x2   :  { %v42_v2 = vsel %vm41_vm0, %v37_v0, 0.0  ;;  %v45_v3 = vsel %vm41_vm0, %v38_v1, 0.0 }
   0x3   :  { %43 = vadd.xlane.f32.xlu0 %v42_v2 }
   0x7   :  { %46 = vadd.xlane.f32.xlu0 %v45_v3 }
   0x8   :  { %15 = vsyncpa [#allocation3], 0  ;;  %v3462_v14 = vld [vmem:[%s4331_s3 + $0x4] ss:$8 sps:$4 sm:$0xff]   ;;  %v3464_v15 = vld [vmem:[%s4331_s3] ss:$8 sps:$4 sm:$0xff]  }
   0x9   :  { %137 = vmatprep.subr.bf16.mxu0 %v3462_v14  ;;  %v3465_v16 = vld [vmem:[%s4331_s3 + $0x14] ss:$8 sps:$4 sm:$0xff]   ;;  %v3467_v17 = vld [vmem:[%s4331_s3 + $0x10] ss:$8 sps:$4 sm:$0xff]   ;;  %v3468_v18 = vld [vmem:[%s4331_s3 + $0x24] ss:$8 sps:$4 sm:$0xff]  }
   0xa   :  { %138 = vmatpush1.bf16.msra.mxu0 %v3464_v15  ;;  %v3470_v19 = vld [vmem:[%s4331_s3 + $0x20] ss:$8 sps:$4 sm:$0xff]   ;;  %v3471_v20 = vld [vmem:[%s4331_s3 + $0x34] ss:$8 sps:$4 sm:$0xff]   ;;  %v3473_v21 = vld [vmem:[%s4331_s3 + $0x30] ss:$8 sps:$4 sm:$0xff]  }
   0xb   :  { %139 = vmatprep.subr.bf16.mxu0 %v3465_v16  ;;  %v3646_v22 = vmov 0   ;;  %v2925_v31 = vld [vmem:[%s4329_s1] ss:$0 sm:$0xff]  ;;  %v3647_v40 = vmov 0.0   ;;  %vm3648_vm1 = vmmov 0   ;;  %s3649_s16 = smov 96  }
   0xc   :  { %169 = vmatprep.mubr.bf16.mxu0 %v3646_v22  ;;  %v2926_v35 = vld [vmem:[%s4330_s2] ss:$0 sm:$0xff]  ;;  %3203 = vmatprep.subr.bf16.mxu1 %v3647_v40  ;;  %s3650_s0 = smov 112   ;;  %s3651_s17 = smov 80   ;;  %vm231_vm2 = vcmask 130048   ;;  %vm737_vm3 = vcmask 1043456  }
   0xd   :  { %3205 = vmatprep.mubr.msk.bf16.mxu1 %vm3648_vm1, %v3647_v40  ;;  %s3652_s18 = smov 64   ;;  %vm629_vm4 = vcmask 64512   ;;  %s3653_s19 = smov 16   ;;  %vm1129_vm5 = vcmask 261120   ;;  %vm1132_vm6 = vcmask 392192  }
   0xe   :  { %140 = vmatpush1.bf16.msra.mxu0 %v3467_v17  ;;  %s3654_s20 = smov 32   ;;  %s3655_s21 = smov 48  }
   0xf   :  { %141 = vmatprep.subr.bf16.mxu0 %v3468_v18 }
  0x12   :  { %142 = vmatpush1.bf16.msra.mxu0 %v3470_v19 }
  0x13   :  { %143 = vmatprep.subr.bf16.mxu0 %v3471_v20 }
  0x16   :  { %144 = vmatpush1.bf16.msra.mxu0 %v3473_v21 }
  0x17   :  { %3197 = vmatprep.subr.bf16.mxu0 %v3647_v40 }
  0x90   :  { %v44_v4 = vpop.xlane.xlu0 %43 }
  0x91   :  { %v49_v5 = vmul.f32 0.015625, %v44_v4 }
  0x93   :  { %v51_v6 = vsub.f32 %v37_v0, %v49_v5 }
  0x94   :  { %v47_v7 = vpop.xlane.xlu0 %46 }
  0x95   :  { %v50_v8 = vmul.f32 0.015625, %v47_v7  ;;  %v53_v9 = vmul.f32 %v51_v6, %v51_v6 }
  0x97   :  { %v52_v10 = vsub.f32 %v38_v1, %v50_v8  ;;  %v55_v11 = vsel %vm41_vm0, %v53_v9, 0.0 }
  0x98   :  { %56 = vadd.xlane.f32.xlu1 %v55_v11 }
  0x99   :  { %v54_v12 = vmul.f32 %v52_v10, %v52_v10 }
  0x9b   :  { %v58_v13 = vsel %vm41_vm0, %v54_v12, 0.0 }
  0x9c   :  { %59 = vadd.xlane.f32.xlu1 %v58_v13 }
 0x125   :  { %v57_v23 = vpop.xlane.xlu1 %56 }
 0x126   :  { %v61_v24 = vmul.f32 0.015625, %v57_v23 }
 0x128   :  { %v63_v25 = vadd.f32 1e-05, %v61_v24 }
 0x129   :  { %v60_v26 = vpop.xlane.xlu1 %59 }
 0x12a   :  { %3542 = vrsqrt.f32 %v63_v25  ;;  %v62_v27 = vmul.f32 0.015625, %v60_v26 }
 0x12c   :  { %v64_v28 = vadd.f32 1e-05, %v62_v27 }
 0x12e   :  { %3544 = vrsqrt.f32 %v64_v28 }
 0x134   :  { %v3543_v29 = vpop.eup %3542 }
 0x135   :  { %v67_v30 = vmul.f32 %v3543_v29, %v51_v6 }
 0x137   :  { %v75_v34 = vmul.f32 %v2925_v31, %v67_v30 }
 0x138   :  { %v3545_v32 = vpop.eup %3544 }
 0x139   :  { %v68_v33 = vmul.f32 %v3545_v32, %v52_v10  ;;  %v3755_v37 = vadd.f32 %v2926_v35, %v75_v34 }
 0x13b   :  { %v76_v36 = vmul.f32 %v2925_v31, %v68_v33 }
 0x13d   :  { %v3757_v38 = vadd.f32 %v2926_v35, %v76_v36 }
 0x13f   :  { %v85_v39 = vpack.c.bf16 %v3757_v38, %v3755_v37 }
 0x141   :  { %2935 = vmatmul.mubr.msk.bf16.vlgmr.msra.gmra.mrb[0].mxu0 %vm41_vm0, %v85_v39 }
 0x142   :  { %3199 = vmatprep.mubr.msk.bf16.mxu0 %vm3648_vm1, %v3647_v40 }
 0x214   :  { %v171_v41 = vpop.f32.mrb[0].mxu0 }
 0x215   :  { %v3764_v42 = vpop.f32.mrb[1].mxu0  ;;  %v220_v48 = vpack.c.bf16 %v171_v41, %v171_v41 }
 0x216   :  { %v175_v43 = vpop.f32.mrb[2].mxu0  ;;  %v726_v16 = vpack.c.bf16 %v3764_v42, %v3764_v42 }
 0x217   :  { %v3770_v44 = vpop.f32.mrb[3].mxu0  ;;  %v3407_v45 = vpack.i.bf16 %v175_v43, %v171_v41  ;;  %v221_v47 = vpack.c.bf16 %v175_v43, %v175_v43 }
 0x218   :  { %v3774_v46 = vpack.i.bf16 %v3770_v44, %v3764_v42  ;;  %v727_v17 = vpack.c.bf16 %v3770_v44, %v3770_v44  ;;  %v739_v18 = vsel %vm737_vm3, %v726_v16, 0 }
 0x219   :  { %3408 = vrot.lane.b32.xlu1 %v3407_v45, %s3649_s16  ;;  %3403 = vrot.lane.b32.xlu0 %v3407_v45, %s3650_s0 }
 0x21a   :  { %v785_v19 = vsel %vm737_vm3, %v727_v17, 0 }
 0x21d   :  { %3413 = vrot.lane.b32.xlu1 %v3407_v45, %s3651_s17  ;;  %279 = vrot.lane.b32.xlu0 %v221_v47, %s3652_s18 }
 0x221   :  { %229 = vrot.lane.b32.xlu1 %v220_v48, %s3652_s18 }
 0x28b   :  { %v3409_v49 = vpop.permute.xlu1 %3408  ;;  %v3404_v50 = vpop.permute.xlu0 %3403 }
 0x28c   :  { %v3406_v51 = vunpack.i.h.bf16 %v3404_v50  ;;  %v3405_v52 = vunpack.i.l.bf16 %v3404_v50  ;;  %v3411_v53 = vunpack.i.h.bf16 %v3409_v49  ;;  %v3410_v54 = vunpack.i.l.bf16 %v3409_v49 }
 0x28e   :  { %v223_v55 = vpack.c.bf16 %v3406_v51, %v3406_v51  ;;  %v222_v56 = vpack.c.bf16 %v3405_v52, %v3405_v52  ;;  %v225_v60 = vpack.c.bf16 %v3411_v53, %v3411_v53  ;;  %v224_v61 = vpack.c.bf16 %v3410_v54, %v3410_v54 }
 0x28f   :  { %v3414_v57 = vpop.permute.xlu1 %3413  ;;  %v280_v58 = vpop.permute.xlu0 %279 }
 0x290   :  { %328 = vrot.lane.b32.xlu1 %v222_v56, %s3652_s18  ;;  %377 = vrot.lane.b32.xlu0 %v223_v55, %s3652_s18  ;;  %v285_v59 = vsel %vm231_vm2, %v280_v58, 0  ;;  %v3416_v62 = vunpack.i.h.bf16 %v3414_v57  ;;  %v3415_v63 = vunpack.i.l.bf16 %v3414_v57 }
 0x291   :  { %3204 = vmatpush3.bf16.xpose.msra.mxu1 %v285_v59 }
 0x292   :  { %3215 = vmatprep.subr.bf16.mxu1 %v3647_v40  ;;  %v227_v2 = vpack.c.bf16 %v3416_v62, %v3416_v62  ;;  %v226_v3 = vpack.c.bf16 %v3415_v63, %v3415_v63 }
 0x293   :  { %v230_v0 = vpop.permute.xlu1 %229 }
 0x294   :  { %v236_v1 = vsel %vm231_vm2, %v230_v0, 0  ;;  %426 = vrot.lane.b32.xlu1 %v224_v61, %s3652_s18  ;;  %475 = vrot.lane.b32.xlu0 %v225_v60, %s3652_s18 }
 0x295   :  { %3198 = vmatpush3.bf16.xpose.msra.mxu0 %v236_v1 }
 0x296   :  { %3209 = vmatprep.subr.bf16.mxu0 %v3647_v40 }
 0x298   :  { %524 = vrot.lane.b32.xlu1 %v226_v3, %s3652_s18  ;;  %573 = vrot.lane.b32.xlu0 %v227_v2, %s3652_s18 }
 0x299   :  { %3206 = vmatmul.mubr.msk.bf16.vlgmr.msra.gmra.mrb[0].mxu1 %vm231_vm2, %v221_v47 }
 0x29a   :  { %3217 = vmatprep.mubr.msk.bf16.mxu1 %vm3648_vm1, %v3647_v40 }
 0x29c   :  { %3200 = vmatmul.mubr.msk.bf16.vlgmr.msra.gmra.mrb[4].mxu0 %vm231_vm2, %v220_v48 }
 0x29d   :  { %3211 = vmatprep.mubr.msk.bf16.mxu0 %vm3648_vm1, %v3647_v40 }
 0x302   :  { %v329_v4 = vpop.permute.xlu1 %328  ;;  %v378_v5 = vpop.permute.xlu0 %377 }
 0x303   :  { %v334_v6 = vsel %vm231_vm2, %v329_v4, 0  ;;  %v383_v7 = vsel %vm231_vm2, %v378_v5, 0 }
 0x304   :  { %3210 = vmatpush3.bf16.xpose.msra.mxu0 %v334_v6  ;;  %3216 = vmatpush3.bf16.xpose.msra.mxu1 %v383_v7 }
 0x305   :  { %3221 = vmatprep.subr.bf16.mxu0 %v3647_v40  ;;  %3227 = vmatprep.subr.bf16.mxu1 %v3647_v40 }
 0x306   :  { %v427_v8 = vpop.permute.xlu1 %426  ;;  %v476_v9 = vpop.permute.xlu0 %475 }
 0x307   :  { %v432_v10 = vsel %vm231_vm2, %v427_v8, 0  ;;  %v481_v11 = vsel %vm231_vm2, %v476_v9, 0 }
 0x30a   :  { %v525_v12 = vpop.permute.xlu1 %524  ;;  %v574_v13 = vpop.permute.xlu0 %573 }
 0x30b   :  { %3212 = vmatmul.mubr.msk.bf16.vlgmr.msra.gmra.mrb[8].mxu0 %vm231_vm2, %v222_v56  ;;  %3218 = vmatmul.mubr.msk.bf16.vlgmr.msra.gmra.mrb[4].mxu1 %vm231_vm2, %v223_v55  ;;  %v530_v14 = vsel %vm231_vm2, %v525_v12, 0  ;;  %v579_v15 = vsel %vm231_vm2, %v574_v13, 0 }
 0x30c   :  { %3222 = vmatpush3.bf16.xpose.msra.mxu0 %v432_v10  ;;  %3228 = vmatpush3.bf16.xpose.msra.mxu1 %v481_v11 }
 0x30d   :  { %3223 = vmatprep.mubr.msk.bf16.mxu0 %vm3648_vm1, %v3647_v40  ;;  %3229 = vmatprep.mubr.msk.bf16.mxu1 %vm3648_vm1, %v3647_v40 }
 0x30e   :  { %3233 = vmatprep.subr.bf16.mxu0 %v3647_v40  ;;  %3239 = vmatprep.subr.bf16.mxu1 %v3647_v40 }
 0x313   :  { %3224 = vmatmul.mubr.msk.bf16.vlgmr.msra.gmra.mrb[12].mxu0 %vm231_vm2, %v224_v61  ;;  %3230 = vmatmul.mubr.msk.bf16.vlgmr.msra.gmra.mrb[8].mxu1 %vm231_vm2, %v225_v60 }
 0x314   :  { %3234 = vmatpush3.bf16.xpose.msra.mxu0 %v530_v14  ;;  %3240 = vmatpush3.bf16.xpose.msra.mxu1 %v579_v15 }
 0x315   :  { %3235 = vmatprep.mubr.msk.bf16.mxu0 %vm3648_vm1, %v3647_v40  ;;  %3241 = vmatprep.mubr.msk.bf16.mxu1 %vm3648_vm1, %v3647_v40 }
 0x316   :  { %3245 = vmatprep.subr.bf16.mxu0 %v3647_v40  ;;  %3251 = vmatprep.subr.bf16.mxu1 %v3647_v40 }
 0x31b   :  { %3236 = vmatmul.mubr.msk.bf16.vlgmr.msra.gmra.mrb[16].mxu0 %vm231_vm2, %v226_v3  ;;  %3242 = vmatmul.mubr.msk.bf16.vlgmr.msra.gmra.mrb[12].mxu1 %vm231_vm2, %v227_v2 }
 0x31c   :  { %3246 = vmatpush3.bf16.msra.mxu0 %v739_v18  ;;  %3252 = vmatpush3.bf16.msra.mxu1 %v785_v19 }
 0x31d   :  { %3253 = vmatprep.mubr.msk.bf16.mxu1 %vm3648_vm1, %v3647_v40  ;;  %3263 = vmatprep.subr.bf16.mxu1 %v3647_v40 }
 0x31e   :  { %3247 = vmatprep.mubr.msk.bf16.mxu0 %vm3648_vm1, %v3647_v40  ;;  %3257 = vmatprep.subr.bf16.mxu0 %v3647_v40 }
 0x36c   :  { %v321_v20 = vpop.f32.mrb[0].mxu1 }
 0x36d   :  { %v622_v21 = vmul.f32 0.25, %v321_v20  ;;  %v3207_v23 = vpop.f32.mrb[1].mxu1 }
 0x36e   :  { %v324_v24 = vpop.f32.mrb[2].mxu1 }
 0x36f   :  { %v3208_v25 = vpop.f32.mrb[3].mxu1  ;;  %v633_v26 = vsel %vm629_vm4, %v622_v21, -inf  ;;  %v272_v27 = vpop.f32.mrb[4].mxu0 }
 0x370   :  { %634 = vmax.xlane.f32.xlu0 %v633_v26  ;;  %v621_v28 = vmul.f32 0.25, %v272_v27  ;;  %v3201_v29 = vpop.f32.mrb[5].mxu0 }
 0x371   :  { %v275_v30 = vpop.f32.mrb[6].mxu0 }
 0x372   :  { %v3202_v31 = vpop.f32.mrb[7].mxu0  ;;  %v630_v32 = vsel %vm629_vm4, %v621_v28, -inf }
 0x373   :  { %631 = vmax.xlane.f32.xlu1 %v630_v32 }
 0x3de   :  { %v370_v33 = vpop.f32.mrb[8].mxu0  ;;  %v419_v34 = vpop.f32.mrb[4].mxu1 }
 0x3df   :  { %v623_v35 = vmul.f32 0.25, %v370_v33  ;;  %v3213_v36 = vpop.f32.mrb[9].mxu0  ;;  %v3219_v39 = vpop.f32.mrb[5].mxu1  ;;  %v624_v43 = vmul.f32 0.25, %v419_v34 }
 0x3e0   :  { %v373_v41 = vpop.f32.mrb[10].mxu0  ;;  %v422_v42 = vpop.f32.mrb[6].mxu1 }
 0x3e1   :  { %v3214_v44 = vpop.f32.mrb[11].mxu0  ;;  %v3220_v45 = vpop.f32.mrb[7].mxu1  ;;  %v636_v47 = vsel %vm629_vm4, %v623_v35, -inf  ;;  %v639_v48 = vsel %vm629_vm4, %v624_v43, -inf }
 0x3e2   :  { %637 = vmax.xlane.f32.xlu0 %v636_v47 }
 0x3e6   :  { %v517_v49 = vpop.f32.mrb[8].mxu1  ;;  %640 = vmax.xlane.f32.xlu0 %v639_v48  ;;  %v468_v50 = vpop.f32.mrb[12].mxu0 }
 0x3e7   :  { %v626_v51 = vmul.f32 0.25, %v517_v49  ;;  %v625_v52 = vmul.f32 0.25, %v468_v50  ;;  %v3225_v53 = vpop.f32.mrb[13].mxu0  ;;  %v3231_v54 = vpop.f32.mrb[9].mxu1 }
 0x3e8   :  { %v471_v55 = vpop.f32.mrb[14].mxu0  ;;  %v520_v56 = vpop.f32.mrb[10].mxu1 }
 0x3e9   :  { %v3226_v57 = vpop.f32.mrb[15].mxu0  ;;  %v3232_v58 = vpop.f32.mrb[11].mxu1  ;;  %v645_v59 = vsel %vm629_vm4, %v626_v51, -inf  ;;  %v642_v60 = vsel %vm629_vm4, %v625_v52, -inf }
 0x3ea   :  { %646 = vmax.xlane.f32.xlu0 %v645_v59  ;;  %643 = vmax.xlane.f32.xlu1 %v642_v60 }
 0x3ee   :  { %v566_v61 = vpop.f32.mrb[16].mxu0  ;;  %v615_v62 = vpop.f32.mrb[12].mxu1 }
 0x3ef   :  { %v627_v63 = vmul.f32 0.25, %v566_v61  ;;  %v628_v0 = vmul.f32 0.25, %v615_v62  ;;  %v3237_v1 = vpop.f32.mrb[17].mxu0  ;;  %v3243_v2 = vpop.f32.mrb[13].mxu1 }
 0x3f0   :  { %v569_v3 = vpop.f32.mrb[18].mxu0  ;;  %v618_v4 = vpop.f32.mrb[14].mxu1 }
 0x3f1   :  { %v3238_v5 = vpop.f32.mrb[19].mxu0  ;;  %v3244_v6 = vpop.f32.mrb[15].mxu1  ;;  %v651_v7 = vsel %vm629_vm4, %v628_v0, -inf  ;;  %v648_v8 = vsel %vm629_vm4, %v627_v63, -inf }
 0x3f2   :  { %652 = vmax.xlane.f32.xlu0 %v651_v7  ;;  %649 = vmax.xlane.f32.xlu1 %v648_v8 }
 0x3fd   :  { %v635_v9 = vpop.xlane.xlu0 %634 }
 0x3fe   :  { %v655_v10 = vsub.f32 %v622_v21, %v635_v9 }
 0x400   :  { %v664_v11 = vmul.f32 1.442695, %v655_v10  ;;  %v632_v14 = vpop.xlane.xlu1 %631 }
 0x401   :  { %v654_v15 = vsub.f32 %v621_v28, %v632_v14 }
 0x402   :  { %3546 = vpow2.f32 %v664_v11 }
 0x403   :  { %3418 = vrot.lane.b32.xlu1 %v3774_v46, %s3650_s0  ;;  %v662_v16 = vmul.f32 1.442695, %v654_v15 }
 0x405   :  { %3548 = vpow2.f32 %v662_v16 }
 0x40c   :  { %v3547_v12 = vpop.eup %3546 }
 0x40d   :  { %v681_v13 = vsel %vm629_vm4, %v3547_v12, 0.0 }
 0x40e   :  { %682 = vadd.xlane.f32.xlu0 %v681_v13 }
 0x40f   :  { %v3846_v17 = vpop.eup %3548 }
 0x410   :  { %v678_v18 = vsel %vm629_vm4, %v3846_v17, 0.0 }
 0x427   :  { %679 = vadd.xlane.f32.xlu1 %v678_v18 }
 0x46f   :  { %v638_v19 = vpop.xlane.xlu0 %637 }
 0x470   :  { %v656_v20 = vsub.f32 %v623_v35, %v638_v19 }
 0x472   :  { %v666_v21 = vmul.f32 1.442695, %v656_v20 }
 0x473   :  { %v641_v23 = vpop.xlane.xlu0 %640 }
 0x474   :  { %3550 = vpow2.f32 %v666_v21  ;;  %v657_v24 = vsub.f32 %v624_v43, %v641_v23 }
 0x476   :  { %v668_v25 = vmul.f32 1.442695, %v657_v24 }
 0x477   :  { %v647_v26 = vpop.xlane.xlu0 %646  ;;  %v644_v27 = vpop.xlane.xlu1 %643 }
 0x478   :  { %3552 = vpow2.f32 %v668_v25  ;;  %v659_v29 = vsub.f32 %v626_v51, %v647_v26  ;;  %v658_v28 = vsub.f32 %v625_v52, %v644_v27 }
 0x47a   :  { %v672_v30 = vmul.f32 1.442695, %v659_v29  ;;  %v670_v31 = vmul.f32 1.442695, %v658_v28 }
 0x47c   :  { %3554 = vpow2.f32 %v672_v30 }
 0x47d   :  { %3556 = vpow2.f32 %v670_v31 }
 0x47e   :  { %v3551_v32 = vpop.eup %3550 }
 0x47f   :  { %v653_v33 = vpop.xlane.xlu0 %652  ;;  %v650_v34 = vpop.xlane.xlu1 %649  ;;  %v684_v36 = vsel %vm629_vm4, %v3551_v32, 0.0 }
 0x480   :  { %v661_v35 = vsub.f32 %v628_v0, %v653_v33  ;;  %v660_v39 = vsub.f32 %v627_v63, %v650_v34  ;;  %685 = vadd.xlane.f32.xlu1 %v684_v36 }
 0x482   :  { %v3553_v41 = vpop.eup %3552  ;;  %v676_v42 = vmul.f32 1.442695, %v661_v35  ;;  %v674_v43 = vmul.f32 1.442695, %v660_v39 }
 0x483   :  { %v687_v44 = vsel %vm629_vm4, %v3553_v41, 0.0  ;;  %v3419_v55 = vpop.permute.xlu1 %3418 }
 0x484   :  { %3558 = vpow2.f32 %v676_v42  ;;  %688 = vadd.xlane.f32.xlu0 %v687_v44  ;;  %v3421_v56 = vunpack.i.h.bf16 %v3419_v55  ;;  %v3420_v63 = vunpack.i.l.bf16 %v3419_v55 }
 0x485   :  { %3560 = vpow2.f32 %v674_v43 }
 0x486   :  { %v3852_v45 = vpop.eup %3554  ;;  %v729_v58 = vpack.c.bf16 %v3421_v56, %v3421_v56  ;;  %v728_v1 = vpack.c.bf16 %v3420_v63, %v3420_v63 }
 0x487   :  { %v3854_v47 = vpop.eup %3556  ;;  %v693_v48 = vsel %vm629_vm4, %v3852_v45, 0.0 }
 0x488   :  { %694 = vadd.xlane.f32.xlu0 %v693_v48  ;;  %v690_v49 = vsel %vm629_vm4, %v3854_v47, 0.0  ;;  %v877_v61 = vsel %vm737_vm3, %v729_v58, 0  ;;  %v831_v3 = vsel %vm737_vm3, %v728_v1, 0 }
 0x489   :  { %691 = vadd.xlane.f32.xlu1 %v690_v49 }
 0x48e   :  { %v3860_v50 = vpop.eup %3558 }
 0x48f   :  { %v3862_v51 = vpop.eup %3560  ;;  %v699_v52 = vsel %vm629_vm4, %v3860_v50, 0.0 }
 0x490   :  { %700 = vadd.xlane.f32.xlu0 %v699_v52  ;;  %v696_v53 = vsel %vm629_vm4, %v3862_v51, 0.0 }
 0x491   :  { %697 = vadd.xlane.f32.xlu1 %v696_v53 }
 0x49b   :  { %v683_v54 = vpop.xlane.xlu0 %682 }
 0x49c   :  { %3562 = vrcp.f32 %v683_v54 }
 0x4a2   :  { %3428 = vrot.lane.b32.xlu1 %v3774_v46, %s3651_s17 }
 0x4a6   :  { %v3563_v57 = vpop.eup %3562  ;;  %3423 = vrot.lane.b32.xlu0 %v3774_v46, %s3649_s16 }
 0x4a7   :  { %v711_v59 = vmul.f32 %v3563_v57, %v3547_v12 }
 0x4a9   :  { %v719_v60 = vpack.c.bf16 %v711_v59, %v711_v59 }
 0x4ab   :  { %3254 = vmatmul.mubr.msk.bf16.vlgmr.msra.gmra.mrb[16].mxu1 %vm629_vm4, %v719_v60 }
 0x4ac   :  { %3264 = vmatpush3.bf16.msra.mxu1 %v877_v61  ;;  %3265 = vmatprep.mubr.msk.bf16.mxu1 %vm3648_vm1, %v3647_v40 }
 0x4ad   :  { %3275 = vmatprep.subr.bf16.mxu1 %v3647_v40 }
 0x4b4   :  { %v680_v62 = vpop.xlane.xlu1 %679 }
 0x4b5   :  { %3564 = vrcp.f32 %v680_v62 }
 0x4bf   :  { %v3565_v0 = vpop.eup %3564 }
 0x4c0   :  { %v710_v46 = vmul.f32 %v3565_v0, %v3846_v17 }
 0x4c2   :  { %v718_v2 = vpack.c.bf16 %v710_v46, %v710_v46 }
 0x4c4   :  { %3248 = vmatmul.mubr.msk.bf16.vlgmr.msra.gmra.mrb[20].mxu0 %vm629_vm4, %v718_v2 }
 0x4c5   :  { %3258 = vmatpush3.bf16.msra.mxu0 %v831_v3  ;;  %3259 = vmatprep.mubr.msk.bf16.mxu0 %vm3648_vm1, %v3647_v40 }
 0x4c6   :  { %3269 = vmatprep.subr.bf16.mxu0 %v3647_v40 }
 0x50d   :  { %v686_v4 = vpop.xlane.xlu1 %685 }
 0x50e   :  { %3566 = vrcp.f32 %v686_v4 }
 0x511   :  { %v689_v5 = vpop.xlane.xlu0 %688 }
 0x512   :  { %3568 = vrcp.f32 %v689_v5 }
 0x515   :  { %v695_v6 = vpop.xlane.xlu0 %694 }
 0x516   :  { %3570 = vrcp.f32 %v695_v6  ;;  %v692_v7 = vpop.xlane.xlu1 %691 }
 0x517   :  { %3572 = vrcp.f32 %v692_v7 }
 0x518   :  { %v3567_v8 = vpop.eup %3566 }
 0x519   :  { %v712_v9 = vmul.f32 %v3567_v8, %v3551_v32 }
 0x51b   :  { %v720_v10 = vpack.c.bf16 %v712_v9, %v712_v9 }
 0x51c   :  { %v3569_v11 = vpop.eup %3568 }
 0x51d   :  { %v713_v12 = vmul.f32 %v3569_v11, %v3553_v41  ;;  %v701_v13 = vpop.xlane.xlu0 %700  ;;  %3260 = vmatmul.mubr.msk.bf16.vlgmr.msra.gmra.mrb[24].mxu0 %vm629_vm4, %v720_v10 }
 0x51e   :  { %3574 = vrcp.f32 %v701_v13  ;;  %v698_v14 = vpop.xlane.xlu1 %697  ;;  %3271 = vmatprep.mubr.msk.bf16.mxu0 %vm3648_vm1, %v3647_v40 }
 0x51f   :  { %3576 = vrcp.f32 %v698_v14  ;;  %v721_v15 = vpack.c.bf16 %v713_v12, %v713_v12 }
 0x520   :  { %v3571_v16 = vpop.eup %3570 }
 0x521   :  { %v3573_v17 = vpop.eup %3572  ;;  %v3424_v18 = vpop.permute.xlu0 %3423  ;;  %3266 = vmatmul.mubr.msk.bf16.vlgmr.msra.gmra.mrb[20].mxu1 %vm629_vm4, %v721_v15  ;;  %v715_v25 = vmul.f32 %v3571_v16, %v3852_v45 }
 0x522   :  { %v3426_v19 = vunpack.i.h.bf16 %v3424_v18  ;;  %v3425_v20 = vunpack.i.l.bf16 %v3424_v18  ;;  %v3429_v21 = vpop.permute.xlu1 %3428  ;;  %3277 = vmatprep.mubr.msk.bf16.mxu1 %vm3648_vm1, %v3647_v40  ;;  %v714_v26 = vmul.f32 %v3573_v17, %v3854_v47 }
 0x523   :  { %v3431_v23 = vunpack.i.h.bf16 %v3429_v21  ;;  %v3430_v24 = vunpack.i.l.bf16 %v3429_v21  ;;  %v723_v36 = vpack.c.bf16 %v715_v25, %v715_v25 }
 0x524   :  { %v731_v27 = vpack.c.bf16 %v3426_v19, %v3426_v19  ;;  %v730_v29 = vpack.c.bf16 %v3425_v20, %v3425_v20  ;;  %v722_v34 = vpack.c.bf16 %v714_v26, %v714_v26 }
 0x525   :  { %v733_v28 = vpack.c.bf16 %v3431_v23, %v3431_v23  ;;  %v732_v30 = vpack.c.bf16 %v3430_v24, %v3430_v24 }
 0x526   :  { %v923_v31 = vsel %vm737_vm3, %v730_v29, 0  ;;  %v969_v32 = vsel %vm737_vm3, %v731_v27, 0 }
 0x527   :  { %3270 = vmatpush3.bf16.msra.mxu0 %v923_v31  ;;  %3276 = vmatpush3.bf16.msra.mxu1 %v969_v32  ;;  %v1015_v39 = vsel %vm737_vm3, %v732_v30, 0  ;;  %v1061_v41 = vsel %vm737_vm3, %v733_v28, 0 }
 0x528   :  { %v3575_v33 = vpop.eup %3574  ;;  %3281 = vmatprep.subr.bf16.mxu0 %v3647_v40  ;;  %3287 = vmatprep.subr.bf16.mxu1 %v3647_v40 }
 0x529   :  { %v3577_v35 = vpop.eup %3576  ;;  %v717_v42 = vmul.f32 %v3575_v33, %v3860_v50 }
 0x52a   :  { %3272 = vmatmul.mubr.msk.bf16.vlgmr.msra.gmra.mrb[28].mxu0 %vm629_vm4, %v722_v34  ;;  %3278 = vmatmul.mubr.msk.bf16.vlgmr.msra.gmra.mrb[24].mxu1 %vm629_vm4, %v723_v36  ;;  %v716_v43 = vmul.f32 %v3577_v35, %v3862_v51 }
 0x52b   :  { %3282 = vmatpush3.bf16.msra.mxu0 %v1015_v39  ;;  %3288 = vmatpush3.bf16.msra.mxu1 %v1061_v41  ;;  %v725_v45 = vpack.c.bf16 %v717_v42, %v717_v42 }
 0x52c   :  { %3283 = vmatprep.mubr.msk.bf16.mxu0 %vm3648_vm1, %v3647_v40  ;;  %3289 = vmatprep.mubr.msk.bf16.mxu1 %vm3648_vm1, %v3647_v40  ;;  %v724_v44 = vpack.c.bf16 %v716_v43, %v716_v43  ;;  %v3474_v43 = vld [vmem:[%s4334_s6] ss:$8 sps:$4 sm:$0xff]  }
 0x532   :  { %3284 = vmatmul.mubr.msk.bf16.vlgmr.msra.gmra.mrb[32].mxu0 %vm629_vm4, %v724_v44  ;;  %3290 = vmatmul.mubr.msk.bf16.vlgmr.msra.gmra.mrb[28].mxu1 %vm629_vm4, %v725_v45  ;;  %v3479_v44 = vld [vmem:[%s4334_s6 + $0x14] ss:$8 sps:$4 sm:$0xff]   ;;  %v3477_v45 = vld [vmem:[%s4334_s6 + $0x10] ss:$8 sps:$4 sm:$0xff]  }
 0x533   :  { %1277 = vmatprep.mubr.bf16.mxu0 %v3646_v22 }
 0x57e   :  { %v821_v47 = vpop.f32.mrb[16].mxu1 }
 0x57f   :  { %v3255_v48 = vpop.f32.mrb[17].mxu1 }
 0x580   :  { %v824_v49 = vpop.f32.mrb[18].mxu1  ;;  %v3480_v48 = vld [vmem:[%s4334_s6 + $0x20] ss:$8 sps:$4 sm:$0xff]  }
 0x581   :  { %v3256_v50 = vpop.f32.mrb[19].mxu1  ;;  %v3485_v49 = vld [vmem:[%s4334_s6 + $0x34] ss:$8 sps:$4 sm:$0xff]  }
 0x582   :  { %v3483_v50 = vld [vmem:[%s4334_s6 + $0x30] ss:$8 sps:$4 sm:$0xff]  }
 0x597   :  { %v775_v52 = vpop.f32.mrb[20].mxu0 }
 0x598   :  { %v3249_v51 = vpop.f32.mrb[21].mxu0 }
 0x599   :  { %v778_v53 = vpop.f32.mrb[22].mxu0  ;;  %v3487_v51 = vld [vmem:[%s4336_s8] sm:$0xff]  }
 0x59a   :  { %v3250_v54 = vpop.f32.mrb[23].mxu0  ;;  %v3488_v53 = vld [vmem:[%s4336_s8 + $0x48] sm:$0xff]  }
 0x59b   :  { %v3489_v54 = vld [vmem:[%s4336_s8 + $0x8] sm:$0xff]  }
 0x5f0   :  { %v867_v55 = vpop.f32.mrb[24].mxu0 }
 0x5f1   :  { %1105 = vrot.lane.b32.xlu1 %v867_v55, %s3653_s19  ;;  %v3261_v56 = vpop.f32.mrb[25].mxu0  ;;  %v3490_v55 = vld [vmem:[%s4336_s8 + $0x50] sm:$0xff]  }
 0x5f2   :  { %v870_v57 = vpop.f32.mrb[26].mxu0  ;;  %v3491_v56 = vld [vmem:[%s4336_s8 + $0x10] sm:$0xff]  }
 0x5f3   :  { %v3262_v58 = vpop.f32.mrb[27].mxu0  ;;  %v3492_v57 = vld [vmem:[%s4336_s8 + $0x58] sm:$0xff]  }
 0x5f4   :  { %v913_v59 = vpop.f32.mrb[20].mxu1  ;;  %v3493_v58 = vld [vmem:[%s4336_s8 + $0x18] sm:$0xff]  }
 0x5f5   :  { %v3267_v60 = vpop.f32.mrb[21].mxu1  ;;  %1107 = vrot.lane.b32.xlu1 %v913_v59, %s3653_s19  ;;  %v3494_v59 = vld [vmem:[%s4336_s8 + $0x60] sm:$0xff]  }
 0x5f6   :  { %v916_v61 = vpop.f32.mrb[22].mxu1  ;;  %v3495_v60 = vld [vmem:[%s4336_s8 + $0x20] sm:$0xff]  }
 0x5f7   :  { %v3268_v62 = vpop.f32.mrb[23].mxu1  ;;  %v3496_v61 = vld [vmem:[%s4336_s8 + $0x68] sm:$0xff]  }
 0x5fd   :  { %v959_v63 = vpop.f32.mrb[28].mxu0  ;;  %v1005_v0 = vpop.f32.mrb[24].mxu1 }
 0x5fe   :  { %v3279_v1 = vpop.f32.mrb[25].mxu1  ;;  %1115 = vrot.lane.b32.xlu1 %v1005_v0, %s3654_s20  ;;  %1113 = vrot.lane.b32.xlu0 %v959_v63, %s3654_s20  ;;  %v3273_v46 = vpop.f32.mrb[29].mxu0 }
 0x5ff   :  { %v962_v2 = vpop.f32.mrb[30].mxu0  ;;  %v1008_v3 = vpop.f32.mrb[26].mxu1 }
 0x600   :  { %v3274_v4 = vpop.f32.mrb[31].mxu0  ;;  %v3280_v5 = vpop.f32.mrb[27].mxu1 }
 0x601   :  { %v2952_v5 = vld [vmem:[%s4332_s4] ss:$0 sm:$0xff] }
 0x605   :  { %v1051_v6 = vpop.f32.mrb[32].mxu0  ;;  %v1097_v7 = vpop.f32.mrb[28].mxu1 }
 0x606   :  { %v3291_v8 = vpop.f32.mrb[29].mxu1  ;;  %1123 = vrot.lane.b32.xlu1 %v1097_v7, %s3655_s21  ;;  %1121 = vrot.lane.b32.xlu0 %v1051_v6, %s3655_s21  ;;  %v3285_v9 = vpop.f32.mrb[33].mxu0 }
 0x607   :  { %v1054_v10 = vpop.f32.mrb[34].mxu0  ;;  %v1100_v11 = vpop.f32.mrb[30].mxu1  ;;  %v2953_v9 = vld [vmem:[%s4333_s5] ss:$0 sm:$0xff] }
 0x608   :  { %v3286_v12 = vpop.f32.mrb[35].mxu0  ;;  %v3292_v13 = vpop.f32.mrb[31].mxu1 }
 0x663   :  { %v1106_v14 = vpop.permute.xlu1 %1105 }
 0x664   :  { %v1127_v18 = vsel %vm231_vm2, %v775_v52, %v1106_v14  ;;  %v3486_v52 = vld [vmem:[%s4336_s8 + $0x40] sm:$0xff]   ;;  %v3497_v14 = vld [vmem:[%s4336_s8 + $0x28] sm:$0xff]  }
 0x665   :  { %3121 = vmatprep.subr.bf16.mxu1 %v3486_v52 }
 0x666   :  { %3122 = vmatpush3.bf16.msra.mxu1 %v3487_v51 }
 0x667   :  { %v1108_v15 = vpop.permute.xlu1 %1107  ;;  %3123 = vmatprep.subr.bf16.mxu1 %v3488_v53 }
 0x668   :  { %v1128_v19 = vsel %vm231_vm2, %v821_v47, %v1108_v15  ;;  %v3482_v47 = vld [vmem:[%s4334_s6 + $0x24] ss:$8 sps:$4 sm:$0xff]   ;;  %v3498_v15 = vld [vmem:[%s4336_s8 + $0x70] sm:$0xff]  }
 0x66a   :  { %3124 = vmatpush3.bf16.msra.mxu1 %v3489_v54 }
 0x66b   :  { %3125 = vmatprep.subr.bf16.mxu1 %v3490_v55 }
 0x66e   :  { %3126 = vmatpush3.bf16.msra.mxu1 %v3491_v56 }
 0x66f   :  { %3127 = vmatprep.subr.bf16.mxu1 %v3492_v57 }
 0x670   :  { %v1116_v16 = vpop.permute.xlu1 %1115  ;;  %v1114_v17 = vpop.permute.xlu0 %1113 }
 0x671   :  { %v1131_v20 = vsel %vm1129_vm5, %v1128_v19, %v1116_v16  ;;  %v1130_v21 = vsel %vm1129_vm5, %v1127_v18, %v1114_v17  ;;  %v3499_v16 = vld [vmem:[%s4336_s8 + $0x30] sm:$0xff]   ;;  %v3500_v17 = vld [vmem:[%s4336_s8 + $0x78] sm:$0xff]   ;;  %v1192_v19 = vlaneseq }
 0x672   :  { %3128 = vmatpush3.bf16.msra.mxu1 %v3493_v58  ;;  %v3501_v18 = vld [vmem:[%s4336_s8 + $0x38] sm:$0xff]  }
 0x673   :  { %3129 = vmatprep.subr.bf16.mxu1 %v3494_v59 }
 0x676   :  { %3130 = vmatpush3.bf16.msra.mxu1 %v3495_v60 }
 0x677   :  { %3131 = vmatprep.subr.bf16.mxu1 %v3496_v61 }
 0x678   :  { %v1124_v23 = vpop.permute.xlu1 %1123  ;;  %v1122_v24 = vpop.permute.xlu0 %1121 }
 0x679   :  { %v1134_v25 = vsel %vm1132_vm6, %v1131_v20, %v1124_v23  ;;  %v1133_v26 = vsel %vm1132_vm6, %v1130_v21, %v1122_v24  ;;  %v4007_v20 = vshrl.u32 %v1192_v19, 7  ;;  %v1190_v23 = vld [vmem:[%s4335_s7] sm:$0x3] }
 0x67a   :  { %v1136_v27 = vadd.f32 %v1134_v25, %v3757_v38  ;;  %v1135_v29 = vadd.f32 %v1133_v26, %v3755_v37  ;;  %v3476_v37 = vld [vmem:[%s4334_s6 + $0x4] ss:$8 sps:$4 sm:$0xff]   ;;  %3132 = vmatpush3.bf16.msra.mxu1 %v3497_v14 }
 0x67b   :  { %1245 = vmatprep.subr.bf16.mxu0 %v3476_v37  ;;  %3133 = vmatprep.subr.bf16.mxu1 %v3498_v15  ;;  %v1194_v21 = vsub.s32 0, %v4007_v20  ;;  %v1198_v24 = vsub.s32 1, %v4007_v20  ;;  %v3072_v20 = vld [vmem:[%s4337_s9 + $0x1] ss:$0 sm:$0xff] }
 0x67c   :  { %v1142_v28 = vsel %vm41_vm0, %v1136_v27, 0.0  ;;  %v1139_v30 = vsel %vm41_vm0, %v1135_v29, 0.0  ;;  %1246 = vmatpush1.bf16.msra.mxu0 %v3474_v43  ;;  %v2963_v43 = vld [vmem:[%s4337_s9] ss:$0 sm:$0xff] }
 0x67d   :  { %1143 = vadd.xlane.f32.xlu1 %v1142_v28  ;;  %1140 = vadd.xlane.f32.xlu0 %v1139_v30  ;;  %v1195_v25 = vrot.slane %v1190_v23, %v1194_v21  ;;  %v1199_v26 = vrot.slane %v1190_v23, %v1198_v24 }
 0x67e   :  { %1247 = vmatprep.subr.bf16.mxu0 %v3479_v44  ;;  %3134 = vmatpush3.bf16.msra.mxu1 %v3499_v16  ;;  %v2982_v16 = vld [vmem:[%s4329_s1 + $0x1] ss:$0 sm:$0xff] }
 0x67f   :  { %3135 = vmatprep.subr.bf16.mxu1 %v3500_v17 }
 0x680   :  { %1248 = vmatpush1.bf16.msra.mxu0 %v3477_v45 }
 0x681   :  { %1249 = vmatprep.subr.bf16.mxu0 %v3482_v47 }
 0x682   :  { %3136 = vmatpush3.bf16.msra.mxu1 %v3501_v18 }
 0x683   :  { %3299 = vmatprep.subr.bf16.mxu1 %v3647_v40 }
 0x684   :  { %1250 = vmatpush1.bf16.msra.mxu0 %v3480_v48 }
 0x685   :  { %1251 = vmatprep.subr.bf16.mxu0 %v3485_v49 }
 0x688   :  { %1252 = vmatpush1.bf16.msra.mxu0 %v3483_v50 }
 0x70a   :  { %v1144_v31 = vpop.xlane.xlu1 %1143  ;;  %v1141_v32 = vpop.xlane.xlu0 %1140 }
 0x70b   :  { %v1146_v33 = vmul.f32 0.015625, %v1144_v31  ;;  %v1145_v34 = vmul.f32 0.015625, %v1141_v32 }
 0x70d   :  { %v1148_v36 = vsub.f32 %v1136_v27, %v1146_v33  ;;  %v1147_v35 = vsub.f32 %v1135_v29, %v1145_v34 }
 0x70f   :  { %v1149_v39 = vmul.f32 %v1147_v35, %v1147_v35  ;;  %v1150_v42 = vmul.f32 %v1148_v36, %v1148_v36 }
 0x711   :  { %v1151_v41 = vsel %vm41_vm0, %v1149_v39, 0.0  ;;  %v1154_v38 = vsel %vm41_vm0, %v1150_v42, 0.0 }
 0x712   :  { %1152 = vadd.xlane.f32.xlu0 %v1151_v41 }
 0x716   :  { %1155 = vadd.xlane.f32.xlu0 %v1154_v38 }
 0x79f   :  { %v1153_v62 = vpop.xlane.xlu0 %1152 }
 0x7a0   :  { %v1157_v63 = vmul.f32 0.015625, %v1153_v62 }
 0x7a2   :  { %v1159_v0 = vadd.f32 1e-05, %v1157_v63 }
 0x7a3   :  { %v1156_v1 = vpop.xlane.xlu0 %1155 }
 0x7a4   :  { %3578 = vrsqrt.f32 %v1159_v0  ;;  %v1158_v46 = vmul.f32 0.015625, %v1156_v1 }
 0x7a6   :  { %v1160_v2 = vadd.f32 1e-05, %v1158_v46  ;;  %v3504_v46 = vld [vmem:[%s4331_s3 + $0x44] ss:$8 sps:$4 sm:$0xff]  }
 0x7a7   :  { %1571 = vmatprep.subr.bf16.mxu0 %v3504_v46 }
 0x7a8   :  { %3580 = vrsqrt.f32 %v1160_v2  ;;  %v3502_v2 = vld [vmem:[%s4331_s3 + $0x40] ss:$8 sps:$4 sm:$0xff]  }
 0x7ae   :  { %v3579_v3 = vpop.eup %3578 }
 0x7af   :  { %v1163_v4 = vmul.f32 %v3579_v3, %v1147_v35  ;;  %v3507_v3 = vld [vmem:[%s4331_s3 + $0x54] ss:$8 sps:$4 sm:$0xff]  }
 0x7b1   :  { %v1171_v7 = vmul.f32 %v2952_v5, %v1163_v4  ;;  %v3505_v4 = vld [vmem:[%s4331_s3 + $0x50] ss:$8 sps:$4 sm:$0xff]  }
 0x7b2   :  { %v3581_v6 = vpop.eup %3580 }
 0x7b3   :  { %v1164_v8 = vmul.f32 %v3581_v6, %v1148_v36  ;;  %v1179_v11 = vadd.f32 %v2953_v9, %v1171_v7  ;;  %v3508_v6 = vld [vmem:[%s4331_s3 + $0x60] ss:$8 sps:$4 sm:$0xff]   ;;  %v3513_v7 = vld [vmem:[%s4331_s3 + $0x74] ss:$8 sps:$4 sm:$0xff]  }
 0x7b5   :  { %v1172_v10 = vmul.f32 %v2952_v5, %v1164_v8  ;;  %v3510_v5 = vld [vmem:[%s4331_s3 + $0x64] ss:$8 sps:$4 sm:$0xff]   ;;  %v3511_v8 = vld [vmem:[%s4331_s3 + $0x70] ss:$8 sps:$4 sm:$0xff]  }
 0x7b7   :  { %v1180_v12 = vadd.f32 %v2953_v9, %v1172_v10 }
 0x7b9   :  { %v1181_v13 = vpack.c.bf16 %v1180_v12, %v1179_v11 }
 0x7bb   :  { %2962 = vmatmul.mubr.msk.bf16.vlgmr.msra.gmra.mrb[36].mxu0 %vm41_vm0, %v1181_v13 }
 0x7bc   :  { %1603 = vmatprep.mubr.bf16.mxu0 %v3646_v22  ;;  %1572 = vmatpush1.bf16.msra.mxu0 %v3502_v2 }
 0x7bd   :  { %1573 = vmatprep.subr.bf16.mxu0 %v3507_v3 }
 0x7c0   :  { %1574 = vmatpush1.bf16.msra.mxu0 %v3505_v4 }
 0x7c1   :  { %1575 = vmatprep.subr.bf16.mxu0 %v3510_v5 }
 0x7c4   :  { %1576 = vmatpush1.bf16.msra.mxu0 %v3508_v6 }
 0x7c5   :  { %1577 = vmatprep.subr.bf16.mxu0 %v3513_v7 }
 0x7c8   :  { %1578 = vmatpush1.bf16.msra.mxu0 %v3511_v8 }
 0x7c9   :  { %3293 = vmatprep.subr.bf16.mxu0 %v3647_v40 }
 0x88e   :  { %v1279_v27 = vpop.f32.mrb[36].mxu0 }
 0x88f   :  { %v1280_v29 = vadd.f32 %v1279_v27, %v1195_v25  ;;  %v1281_v28 = vpop.f32.mrb[37].mxu0 }
 0x890   :  { %v1282_v30 = vadd.f32 %v1281_v28, %v1199_v26  ;;  %v1283_v31 = vpop.f32.mrb[38].mxu0 }
 0x891   :  { %v1284_v32 = vadd.f32 %v1283_v31, %v1195_v25  ;;  %v1285_v33 = vpop.f32.mrb[39].mxu0  ;;  %v1288_v36 = vmax.f32 %v1280_v29, 0.0  ;;  %v2983_v25 = vld [vmem:[%s4330_s2 + $0x1] ss:$0 sm:$0xff] }
 0x892   :  { %v1286_v34 = vadd.f32 %v1285_v33, %v1199_v26  ;;  %v1289_v39 = vmax.f32 %v1282_v30, 0.0 }
 0x893   :  { %v1290_v35 = vmax.f32 %v1284_v32, 0.0 }
 0x894   :  { %v1291_v41 = vmax.f32 %v1286_v34, 0.0 }
 0x895   :  { %v1292_v42 = vpack.c.bf16 %v1290_v35, %v1288_v36 }
 0x896   :  { %v1293_v38 = vpack.c.bf16 %v1291_v41, %v1289_v39 }
 0x898   :  { %1461 = vmatprep.mubr.bf16.mxu1 %v1293_v38 }
 0x899   :  { %1462 = vmatmul.mubr.bf16.vlgmr.msra.gmra.mrb[32].mxu1 %v1292_v42 }
 0x89a   :  { %3301 = vmatprep.mubr.msk.bf16.mxu1 %vm3648_vm1, %v3647_v40 }
 0x96c   :  { %v3137_v37 = vpop.f32.mrb[32].mxu1 }
 0x96d   :  { %v3138_v44 = vpop.f32.mrb[33].mxu1 }
 0x96e   :  { %v3139_v45 = vadd.f32 %v3138_v44, %v3137_v37  ;;  %v3140_v47 = vpop.f32.mrb[34].mxu1 }
 0x96f   :  { %v3141_v48 = vpop.f32.mrb[35].mxu1 }
 0x970   :  { %v1464_v49 = vadd.f32 %v3139_v45, %v2963_v43  ;;  %v3142_v50 = vadd.f32 %v3141_v48, %v3140_v47 }
 0x972   :  { %v1467_v52 = vadd.f32 %v3142_v50, %v2963_v43  ;;  %v1470_v51 = vadd.f32 %v1464_v49, %v1179_v11 }
 0x974   :  { %v1476_v53 = vsel %vm41_vm0, %v1470_v51, 0.0  ;;  %v1471_v54 = vadd.f32 %v1467_v52, %v1180_v12 }
 0x975   :  { %1477 = vadd.xlane.f32.xlu0 %v1476_v53 }
 0x976   :  { %v1479_v55 = vsel %vm41_vm0, %v1471_v54, 0.0 }
 0x977   :  { %1480 = vadd.xlane.f32.xlu1 %v1479_v55 }
 0xa02   :  { %v1478_v56 = vpop.xlane.xlu0 %1477 }
 0xa03   :  { %v1482_v57 = vmul.f32 0.015625, %v1478_v56 }
 0xa04   :  { %v1481_v58 = vpop.xlane.xlu1 %1480 }
 0xa05   :  { %v1484_v59 = vsub.f32 %v1470_v51, %v1482_v57  ;;  %v1483_v60 = vmul.f32 0.015625, %v1481_v58 }
 0xa07   :  { %v1485_v61 = vsub.f32 %v1471_v54, %v1483_v60  ;;  %v1486_v62 = vmul.f32 %v1484_v59, %v1484_v59 }
 0xa09   :  { %v1488_v63 = vsel %vm41_vm0, %v1486_v62, 0.0  ;;  %v1487_v0 = vmul.f32 %v1485_v61, %v1485_v61 }
 0xa0a   :  { %1489 = vadd.xlane.f32.xlu0 %v1488_v63 }
 0xa0b   :  { %v1491_v1 = vsel %vm41_vm0, %v1487_v0, 0.0 }
 0xa0c   :  { %1492 = vadd.xlane.f32.xlu1 %v1491_v1 }
 0xa97   :  { %v1490_v9 = vpop.xlane.xlu0 %1489 }
 0xa98   :  { %v1494_v10 = vmul.f32 0.015625, %v1490_v9 }
 0xa99   :  { %v1493_v11 = vpop.xlane.xlu1 %1492 }
 0xa9a   :  { %v1496_v12 = vadd.f32 1e-05, %v1494_v10  ;;  %v1495_v13 = vmul.f32 0.015625, %v1493_v11 }
 0xa9c   :  { %3582 = vrsqrt.f32 %v1496_v12  ;;  %v1497_v14 = vadd.f32 1e-05, %v1495_v13 }
 0xa9e   :  { %3584 = vrsqrt.f32 %v1497_v14 }
 0xaa6   :  { %v3583_v15 = vpop.eup %3582 }
 0xaa7   :  { %v1500_v17 = vmul.f32 %v3583_v15, %v1484_v59 }
 0xaa8   :  { %v3585_v18 = vpop.eup %3584 }
 0xaa9   :  { %v1508_v19 = vmul.f32 %v2982_v16, %v1500_v17  ;;  %v1501_v23 = vmul.f32 %v3585_v18, %v1485_v61 }
 0xaab   :  { %v1509_v26 = vmul.f32 %v2982_v16, %v1501_v23  ;;  %v4058_v27 = vadd.f32 %v2983_v25, %v1508_v19 }
 0xaad   :  { %v4060_v29 = vadd.f32 %v2983_v25, %v1509_v26 }
 0xaaf   :  { %v1518_v28 = vpack.c.bf16 %v4060_v29, %v4058_v27 }
 0xab1   :  { %3000 = vmatmul.mubr.msk.bf16.vlgmr.msra.gmra.mrb[40].mxu0 %vm41_vm0, %v1518_v28 }
 0xab2   :  { %3295 = vmatprep.mubr.msk.bf16.mxu0 %vm3648_vm1, %v3647_v40 }
 0xb84   :  { %v1605_v30 = vpop.f32.mrb[40].mxu0 }
 0xb85   :  { %v4067_v31 = vpop.f32.mrb[41].mxu0  ;;  %v1654_v39 = vpack.c.bf16 %v1605_v30, %v1605_v30 }
 0xb86   :  { %v1609_v32 = vpop.f32.mrb[42].mxu0  ;;  %v2158_v6 = vpack.c.bf16 %v4067_v31, %v4067_v31 }
 0xb87   :  { %v4069_v33 = vpop.f32.mrb[43].mxu0  ;;  %v3437_v34 = vpack.i.bf16 %v1609_v32, %v1605_v30  ;;  %v1655_v35 = vpack.c.bf16 %v1609_v32, %v1609_v32 }
 0xb88   :  { %v4073_v36 = vpack.i.bf16 %v4069_v33, %v4067_v31  ;;  %v2159_v7 = vpack.c.bf16 %v4069_v33, %v4069_v33  ;;  %v2170_v8 = vsel %vm737_vm3, %v2158_v6, 0 }
 0xb89   :  { %3438 = vrot.lane.b32.xlu1 %v3437_v34, %s3649_s16  ;;  %3433 = vrot.lane.b32.xlu0 %v3437_v34, %s3650_s0 }
 0xb8a   :  { %v2216_v9 = vsel %vm737_vm3, %v2159_v7, 0 }
 0xb8d   :  { %3443 = vrot.lane.b32.xlu1 %v3437_v34, %s3651_s17  ;;  %1712 = vrot.lane.b32.xlu0 %v1655_v35, %s3652_s18 }
 0xb91   :  { %1663 = vrot.lane.b32.xlu1 %v1654_v39, %s3652_s18 }
 0xbfb   :  { %v3439_v41 = vpop.permute.xlu1 %3438  ;;  %v3434_v42 = vpop.permute.xlu0 %3433 }
 0xbfc   :  { %v3436_v38 = vunpack.i.h.bf16 %v3434_v42  ;;  %v3435_v37 = vunpack.i.l.bf16 %v3434_v42  ;;  %v3441_v43 = vunpack.i.h.bf16 %v3439_v41  ;;  %v3440_v44 = vunpack.i.l.bf16 %v3439_v41 }
 0xbfe   :  { %v1657_v45 = vpack.c.bf16 %v3436_v38, %v3436_v38  ;;  %v1656_v47 = vpack.c.bf16 %v3435_v37, %v3435_v37  ;;  %v1659_v52 = vpack.c.bf16 %v3441_v43, %v3441_v43  ;;  %v1658_v51 = vpack.c.bf16 %v3440_v44, %v3440_v44 }
 0xbff   :  { %v3444_v48 = vpop.permute.xlu1 %3443  ;;  %v1713_v49 = vpop.permute.xlu0 %1712 }
 0xc00   :  { %v1718_v50 = vsel %vm231_vm2, %v1713_v49, 0  ;;  %1761 = vrot.lane.b32.xlu1 %v1656_v47, %s3652_s18  ;;  %1810 = vrot.lane.b32.xlu0 %v1657_v45, %s3652_s18  ;;  %v3446_v53 = vunpack.i.h.bf16 %v3444_v48  ;;  %v3445_v54 = vunpack.i.l.bf16 %v3444_v48 }
 0xc01   :  { %3300 = vmatpush3.bf16.xpose.msra.mxu1 %v1718_v50 }
 0xc02   :  { %3311 = vmatprep.subr.bf16.mxu1 %v3647_v40  ;;  %v1661_v57 = vpack.c.bf16 %v3446_v53, %v3446_v53  ;;  %v1660_v58 = vpack.c.bf16 %v3445_v54, %v3445_v54 }
 0xc03   :  { %v1664_v55 = vpop.permute.xlu1 %1663 }
 0xc04   :  { %v1669_v56 = vsel %vm231_vm2, %v1664_v55, 0  ;;  %1859 = vrot.lane.b32.xlu1 %v1658_v51, %s3652_s18  ;;  %1908 = vrot.lane.b32.xlu0 %v1659_v52, %s3652_s18 }
 0xc05   :  { %3294 = vmatpush3.bf16.xpose.msra.mxu0 %v1669_v56 }
 0xc06   :  { %3305 = vmatprep.subr.bf16.mxu0 %v3647_v40 }
 0xc08   :  { %1957 = vrot.lane.b32.xlu1 %v1660_v58, %s3652_s18  ;;  %2006 = vrot.lane.b32.xlu0 %v1661_v57, %s3652_s18 }
 0xc09   :  { %3302 = vmatmul.mubr.msk.bf16.vlgmr.msra.gmra.mrb[36].mxu1 %vm231_vm2, %v1655_v35 }
 0xc0a   :  { %3313 = vmatprep.mubr.msk.bf16.mxu1 %vm3648_vm1, %v3647_v40 }
 0xc0c   :  { %3296 = vmatmul.mubr.msk.bf16.vlgmr.msra.gmra.mrb[44].mxu0 %vm231_vm2, %v1654_v39 }
 0xc0d   :  { %3307 = vmatprep.mubr.msk.bf16.mxu0 %vm3648_vm1, %v3647_v40 }
 0xc72   :  { %v1762_v59 = vpop.permute.xlu1 %1761  ;;  %v1811_v60 = vpop.permute.xlu0 %1810 }
 0xc73   :  { %v1767_v61 = vsel %vm231_vm2, %v1762_v59, 0  ;;  %v1816_v62 = vsel %vm231_vm2, %v1811_v60, 0 }
 0xc74   :  { %3306 = vmatpush3.bf16.xpose.msra.mxu0 %v1767_v61  ;;  %3312 = vmatpush3.bf16.xpose.msra.mxu1 %v1816_v62 }
 0xc75   :  { %3317 = vmatprep.subr.bf16.mxu0 %v3647_v40  ;;  %3323 = vmatprep.subr.bf16.mxu1 %v3647_v40 }
 0xc76   :  { %v1860_v63 = vpop.permute.xlu1 %1859  ;;  %v1909_v0 = vpop.permute.xlu0 %1908 }
 0xc77   :  { %v1865_v1 = vsel %vm231_vm2, %v1860_v63, 0  ;;  %v1914_v46 = vsel %vm231_vm2, %v1909_v0, 0 }
 0xc7a   :  { %v1958_v2 = vpop.permute.xlu1 %1957  ;;  %v2007_v3 = vpop.permute.xlu0 %2006 }
 0xc7b   :  { %3308 = vmatmul.mubr.msk.bf16.vlgmr.msra.gmra.mrb[48].mxu0 %vm231_vm2, %v1656_v47  ;;  %3314 = vmatmul.mubr.msk.bf16.vlgmr.msra.gmra.mrb[40].mxu1 %vm231_vm2, %v1657_v45  ;;  %v1963_v4 = vsel %vm231_vm2, %v1958_v2, 0  ;;  %v2012_v5 = vsel %vm231_vm2, %v2007_v3, 0 }
 0xc7c   :  { %3318 = vmatpush3.bf16.xpose.msra.mxu0 %v1865_v1  ;;  %3324 = vmatpush3.bf16.xpose.msra.mxu1 %v1914_v46 }
 0xc7d   :  { %3319 = vmatprep.mubr.msk.bf16.mxu0 %vm3648_vm1, %v3647_v40  ;;  %3325 = vmatprep.mubr.msk.bf16.mxu1 %vm3648_vm1, %v3647_v40 }
 0xc7e   :  { %3329 = vmatprep.subr.bf16.mxu0 %v3647_v40  ;;  %3335 = vmatprep.subr.bf16.mxu1 %v3647_v40 }
 0xc83   :  { %3320 = vmatmul.mubr.msk.bf16.vlgmr.msra.gmra.mrb[52].mxu0 %vm231_vm2, %v1658_v51  ;;  %3326 = vmatmul.mubr.msk.bf16.vlgmr.msra.gmra.mrb[44].mxu1 %vm231_vm2, %v1659_v52 }
 0xc84   :  { %3330 = vmatpush3.bf16.xpose.msra.mxu0 %v1963_v4  ;;  %3336 = vmatpush3.bf16.xpose.msra.mxu1 %v2012_v5 }
 0xc85   :  { %3331 = vmatprep.mubr.msk.bf16.mxu0 %vm3648_vm1, %v3647_v40  ;;  %3337 = vmatprep.mubr.msk.bf16.mxu1 %vm3648_vm1, %v3647_v40 }
 0xc86   :  { %3341 = vmatprep.subr.bf16.mxu0 %v3647_v40  ;;  %3347 = vmatprep.subr.bf16.mxu1 %v3647_v40 }
 0xc8b   :  { %3332 = vmatmul.mubr.msk.bf16.vlgmr.msra.gmra.mrb[56].mxu0 %vm231_vm2, %v1660_v58  ;;  %3338 = vmatmul.mubr.msk.bf16.vlgmr.msra.gmra.mrb[48].mxu1 %vm231_vm2, %v1661_v57 }
 0xc8c   :  { %3342 = vmatpush3.bf16.msra.mxu0 %v2170_v8  ;;  %3348 = vmatpush3.bf16.msra.mxu1 %v2216_v9 }
 0xc8d   :  { %3349 = vmatprep.mubr.msk.bf16.mxu1 %vm3648_vm1, %v3647_v40  ;;  %3359 = vmatprep.subr.bf16.mxu1 %v3647_v40 }
 0xc8e   :  { %3343 = vmatprep.mubr.msk.bf16.mxu0 %vm3648_vm1, %v3647_v40  ;;  %3353 = vmatprep.subr.bf16.mxu0 %v3647_v40 }
 0xcdc   :  { %v1754_v10 = vpop.f32.mrb[36].mxu1 }
 0xcdd   :  { %v2055_v11 = vmul.f32 0.25, %v1754_v10  ;;  %v3303_v12 = vpop.f32.mrb[37].mxu1 }
 0xcde   :  { %v1757_v13 = vpop.f32.mrb[38].mxu1 }
 0xcdf   :  { %v3304_v14 = vpop.f32.mrb[39].mxu1  ;;  %v2065_v15 = vsel %vm629_vm4, %v2055_v11, -inf  ;;  %v1705_v16 = vpop.f32.mrb[44].mxu0 }
 0xce0   :  { %2066 = vmax.xlane.f32.xlu0 %v2065_v15  ;;  %v2054_v17 = vmul.f32 0.25, %v1705_v16  ;;  %v3297_v18 = vpop.f32.mrb[45].mxu0 }
 0xce1   :  { %v1708_v19 = vpop.f32.mrb[46].mxu0 }
 0xce2   :  { %v3298_v23 = vpop.f32.mrb[47].mxu0  ;;  %v2062_v25 = vsel %vm629_vm4, %v2054_v17, -inf }
 0xce3   :  { %2063 = vmax.xlane.f32.xlu1 %v2062_v25 }
 0xd4e   :  { %v1803_v26 = vpop.f32.mrb[48].mxu0  ;;  %v1852_v28 = vpop.f32.mrb[40].mxu1 }
 0xd4f   :  { %v2056_v30 = vmul.f32 0.25, %v1803_v26  ;;  %v3309_v31 = vpop.f32.mrb[49].mxu0  ;;  %v3315_v32 = vpop.f32.mrb[41].mxu1  ;;  %v2057_v35 = vmul.f32 0.25, %v1852_v28 }
 0xd50   :  { %v1806_v33 = vpop.f32.mrb[50].mxu0  ;;  %v1855_v34 = vpop.f32.mrb[42].mxu1 }
 0xd51   :  { %v3310_v39 = vpop.f32.mrb[51].mxu0  ;;  %v3316_v41 = vpop.f32.mrb[43].mxu1  ;;  %v2068_v42 = vsel %vm629_vm4, %v2056_v30, -inf  ;;  %v2071_v38 = vsel %vm629_vm4, %v2057_v35, -inf }
 0xd52   :  { %2069 = vmax.xlane.f32.xlu0 %v2068_v42 }
 0xd56   :  { %v1950_v37 = vpop.f32.mrb[44].mxu1  ;;  %2072 = vmax.xlane.f32.xlu0 %v2071_v38  ;;  %v1901_v43 = vpop.f32.mrb[52].mxu0 }
 0xd57   :  { %v2059_v44 = vmul.f32 0.25, %v1950_v37  ;;  %v2058_v45 = vmul.f32 0.25, %v1901_v43  ;;  %v3321_v47 = vpop.f32.mrb[53].mxu0  ;;  %v3327_v48 = vpop.f32.mrb[45].mxu1 }
 0xd58   :  { %v1904_v49 = vpop.f32.mrb[54].mxu0  ;;  %v1953_v50 = vpop.f32.mrb[46].mxu1 }
 0xd59   :  { %v3322_v52 = vpop.f32.mrb[55].mxu0  ;;  %v3328_v51 = vpop.f32.mrb[47].mxu1  ;;  %v2077_v53 = vsel %vm629_vm4, %v2059_v44, -inf  ;;  %v2074_v54 = vsel %vm629_vm4, %v2058_v45, -inf }
 0xd5a   :  { %2078 = vmax.xlane.f32.xlu0 %v2077_v53  ;;  %2075 = vmax.xlane.f32.xlu1 %v2074_v54 }
 0xd5e   :  { %v1999_v55 = vpop.f32.mrb[56].mxu0  ;;  %v2048_v56 = vpop.f32.mrb[48].mxu1 }
 0xd5f   :  { %v2060_v57 = vmul.f32 0.25, %v1999_v55  ;;  %v2061_v58 = vmul.f32 0.25, %v2048_v56  ;;  %v3333_v59 = vpop.f32.mrb[57].mxu0  ;;  %v3339_v60 = vpop.f32.mrb[49].mxu1 }
 0xd60   :  { %v2002_v61 = vpop.f32.mrb[58].mxu0  ;;  %v2051_v62 = vpop.f32.mrb[50].mxu1 }
 0xd61   :  { %v3334_v63 = vpop.f32.mrb[59].mxu0  ;;  %v3340_v0 = vpop.f32.mrb[51].mxu1  ;;  %v2083_v1 = vsel %vm629_vm4, %v2061_v58, -inf  ;;  %v2080_v46 = vsel %vm629_vm4, %v2060_v57, -inf }
 0xd62   :  { %2084 = vmax.xlane.f32.xlu0 %v2083_v1  ;;  %2081 = vmax.xlane.f32.xlu1 %v2080_v46 }
 0xd6d   :  { %v2067_v2 = vpop.xlane.xlu0 %2066 }
 0xd6e   :  { %v2087_v3 = vsub.f32 %v2055_v11, %v2067_v2 }
 0xd70   :  { %v2096_v4 = vmul.f32 1.442695, %v2087_v3  ;;  %v2064_v7 = vpop.xlane.xlu1 %2063 }
 0xd71   :  { %v2086_v8 = vsub.f32 %v2054_v17, %v2064_v7 }
 0xd72   :  { %3586 = vpow2.f32 %v2096_v4 }
 0xd73   :  { %3448 = vrot.lane.b32.xlu1 %v4073_v36, %s3650_s0  ;;  %v2094_v9 = vmul.f32 1.442695, %v2086_v8 }
 0xd75   :  { %3588 = vpow2.f32 %v2094_v9 }
 0xd7c   :  { %v3587_v5 = vpop.eup %3586 }
 0xd7d   :  { %v2113_v6 = vsel %vm629_vm4, %v3587_v5, 0.0 }
 0xd7e   :  { %2114 = vadd.xlane.f32.xlu0 %v2113_v6 }
 0xd7f   :  { %v4145_v10 = vpop.eup %3588 }
 0xd80   :  { %v2110_v12 = vsel %vm629_vm4, %v4145_v10, 0.0 }
 0xd97   :  { %2111 = vadd.xlane.f32.xlu1 %v2110_v12 }
 0xddf   :  { %v2070_v11 = vpop.xlane.xlu0 %2069 }
 0xde0   :  { %v2088_v13 = vsub.f32 %v2056_v30, %v2070_v11 }
 0xde2   :  { %v2098_v14 = vmul.f32 1.442695, %v2088_v13 }
 0xde3   :  { %v2073_v15 = vpop.xlane.xlu0 %2072 }
 0xde4   :  { %3590 = vpow2.f32 %v2098_v14  ;;  %v2089_v16 = vsub.f32 %v2057_v35, %v2073_v15 }
 0xde6   :  { %v2100_v18 = vmul.f32 1.442695, %v2089_v16 }
 0xde7   :  { %v2079_v19 = vpop.xlane.xlu0 %2078  ;;  %v2076_v23 = vpop.xlane.xlu1 %2075 }
 0xde8   :  { %3592 = vpow2.f32 %v2100_v18  ;;  %v2091_v25 = vsub.f32 %v2059_v44, %v2079_v19  ;;  %v2090_v17 = vsub.f32 %v2058_v45, %v2076_v23 }
 0xdea   :  { %v2104_v26 = vmul.f32 1.442695, %v2091_v25  ;;  %v2102_v28 = vmul.f32 1.442695, %v2090_v17 }
 0xdec   :  { %3594 = vpow2.f32 %v2104_v26 }
 0xded   :  { %3596 = vpow2.f32 %v2102_v28 }
 0xdee   :  { %v3591_v31 = vpop.eup %3590 }
 0xdef   :  { %v2085_v32 = vpop.xlane.xlu0 %2084  ;;  %v2082_v33 = vpop.xlane.xlu1 %2081  ;;  %v2116_v34 = vsel %vm629_vm4, %v3591_v31, 0.0 }
 0xdf0   :  { %v2093_v30 = vsub.f32 %v2061_v58, %v2085_v32  ;;  %v2092_v39 = vsub.f32 %v2060_v57, %v2082_v33  ;;  %2117 = vadd.xlane.f32.xlu1 %v2116_v34 }
 0xdf2   :  { %v3593_v41 = vpop.eup %3592  ;;  %v2108_v35 = vmul.f32 1.442695, %v2093_v30  ;;  %v2106_v42 = vmul.f32 1.442695, %v2092_v39 }
 0xdf3   :  { %v2119_v38 = vsel %vm629_vm4, %v3593_v41, 0.0  ;;  %v3449_v51 = vpop.permute.xlu1 %3448 }
 0xdf4   :  { %3598 = vpow2.f32 %v2108_v35  ;;  %2120 = vadd.xlane.f32.xlu0 %v2119_v38  ;;  %v3451_v53 = vunpack.i.h.bf16 %v3449_v51  ;;  %v3450_v60 = vunpack.i.l.bf16 %v3449_v51 }
 0xdf5   :  { %3600 = vpow2.f32 %v2106_v42 }
 0xdf6   :  { %v4151_v37 = vpop.eup %3594  ;;  %v2161_v55 = vpack.c.bf16 %v3451_v53, %v3451_v53  ;;  %v2160_v62 = vpack.c.bf16 %v3450_v60, %v3450_v60 }
 0xdf7   :  { %v4153_v43 = vpop.eup %3596  ;;  %v2125_v44 = vsel %vm629_vm4, %v4151_v37, 0.0 }
 0xdf8   :  { %2126 = vadd.xlane.f32.xlu0 %v2125_v44  ;;  %v2122_v45 = vsel %vm629_vm4, %v4153_v43, 0.0  ;;  %v2308_v58 = vsel %vm737_vm3, %v2161_v55, 0  ;;  %v2262_v0 = vsel %vm737_vm3, %v2160_v62, 0 }
 0xdf9   :  { %2123 = vadd.xlane.f32.xlu1 %v2122_v45 }
 0xdfe   :  { %v4159_v47 = vpop.eup %3598 }
 0xdff   :  { %v4161_v48 = vpop.eup %3600  ;;  %v2131_v49 = vsel %vm629_vm4, %v4159_v47, 0.0 }
 0xe00   :  { %2132 = vadd.xlane.f32.xlu0 %v2131_v49  ;;  %v2128_v50 = vsel %vm629_vm4, %v4161_v48, 0.0 }
 0xe01   :  { %2129 = vadd.xlane.f32.xlu1 %v2128_v50 }
 0xe0b   :  { %v2115_v52 = vpop.xlane.xlu0 %2114 }
 0xe0c   :  { %3602 = vrcp.f32 %v2115_v52 }
 0xe12   :  { %3458 = vrot.lane.b32.xlu1 %v4073_v36, %s3651_s17 }
 0xe16   :  { %v3603_v54 = vpop.eup %3602  ;;  %3453 = vrot.lane.b32.xlu0 %v4073_v36, %s3649_s16  ;;  %s3656_s16 = smov [#allocation2]  }
 0xe17   :  { %v2143_v56 = vmul.f32 %v3603_v54, %v3587_v5  ;;  %s2914_s0 = sshll.u32 %s3656_s16, 4  ;;  %s2915_s0 = int_to_ptr.vmem [resolvable:$true] %s2914_s0 }
 0xe18   :  { %s3622_s17 = scalar_lea.vmem %s2915_s0, 256  ;;  %p3627_p1 = scmp.lt.s32.totalorder %s2915_s0, %s2915_s0 }
 0xe19   :  { %v2151_v57 = vpack.c.bf16 %v2143_v56, %v2143_v56  ;;  %p3623_p0 = scmp.ne.s32.totalorder %s2915_s0, %s3622_s17  ;;  %p3628_p2 = scmp.lt.s32.totalorder %s3622_s17, %s3622_s17 }
 0xe1b   :  { %3350 = vmatmul.mubr.msk.bf16.vlgmr.msra.gmra.mrb[52].mxu1 %vm629_vm4, %v2151_v57  ;;  %p3629_p3 = por %p3628_p2, %p3627_p1 }
 0xe1c   :  { %3360 = vmatpush3.bf16.msra.mxu1 %v2308_v58  ;;  %3361 = vmatprep.mubr.msk.bf16.mxu1 %vm3648_vm1, %v3647_v40 }
 0xe1d   :  { %3371 = vmatprep.subr.bf16.mxu1 %v3647_v40  ;;  %p3630_p4 = pnand %p3629_p3, %p3623_p0 }
 0xe24   :  { %v2112_v59 = vpop.xlane.xlu1 %2111 }
 0xe25   :  { %3604 = vrcp.f32 %v2112_v59 }
 0xe2f   :  { %v3605_v61 = vpop.eup %3604 }
 0xe30   :  { %v2142_v36 = vmul.f32 %v3605_v61, %v4145_v10 }
 0xe32   :  { %v2150_v63 = vpack.c.bf16 %v2142_v36, %v2142_v36 }
 0xe34   :  { %3344 = vmatmul.mubr.msk.bf16.vlgmr.msra.gmra.mrb[60].mxu0 %vm629_vm4, %v2150_v63 }
 0xe35   :  { %3354 = vmatpush3.bf16.msra.mxu0 %v2262_v0  ;;  %3355 = vmatprep.mubr.msk.bf16.mxu0 %vm3648_vm1, %v3647_v40 }
 0xe36   :  { %3365 = vmatprep.subr.bf16.mxu0 %v3647_v40 }
 0xe7d   :  { %v2118_v1 = vpop.xlane.xlu1 %2117 }
 0xe7e   :  { %3606 = vrcp.f32 %v2118_v1 }
 0xe81   :  { %v2121_v46 = vpop.xlane.xlu0 %2120 }
 0xe82   :  { %3608 = vrcp.f32 %v2121_v46 }
 0xe85   :  { %v2127_v2 = vpop.xlane.xlu0 %2126 }
 0xe86   :  { %3610 = vrcp.f32 %v2127_v2  ;;  %v2124_v3 = vpop.xlane.xlu1 %2123 }
 0xe87   :  { %3612 = vrcp.f32 %v2124_v3 }
 0xe88   :  { %v3607_v4 = vpop.eup %3606 }
 0xe89   :  { %v2144_v5 = vmul.f32 %v3607_v4, %v3591_v31 }
 0xe8b   :  { %v2152_v6 = vpack.c.bf16 %v2144_v5, %v2144_v5 }
 0xe8c   :  { %v3609_v7 = vpop.eup %3608 }
 0xe8d   :  { %v2145_v8 = vmul.f32 %v3609_v7, %v3593_v41  ;;  %v2133_v9 = vpop.xlane.xlu0 %2132  ;;  %3356 = vmatmul.mubr.msk.bf16.vlgmr.msra.gmra.mrb[64].mxu0 %vm629_vm4, %v2152_v6 }
 0xe8e   :  { %3614 = vrcp.f32 %v2133_v9  ;;  %v2130_v10 = vpop.xlane.xlu1 %2129  ;;  %3367 = vmatprep.mubr.msk.bf16.mxu0 %vm3648_vm1, %v3647_v40 }
 0xe8f   :  { %3616 = vrcp.f32 %v2130_v10  ;;  %v2153_v12 = vpack.c.bf16 %v2145_v8, %v2145_v8 }
 0xe90   :  { %v3611_v11 = vpop.eup %3610 }
 0xe91   :  { %v3613_v13 = vpop.eup %3612  ;;  %v3454_v14 = vpop.permute.xlu0 %3453  ;;  %3362 = vmatmul.mubr.msk.bf16.vlgmr.msra.gmra.mrb[56].mxu1 %vm629_vm4, %v2153_v12  ;;  %v2147_v25 = vmul.f32 %v3611_v11, %v4151_v37 }
 0xe92   :  { %v3456_v15 = vunpack.i.h.bf16 %v3454_v14  ;;  %v3455_v16 = vunpack.i.l.bf16 %v3454_v14  ;;  %v3459_v18 = vpop.permute.xlu1 %3458  ;;  %3373 = vmatprep.mubr.msk.bf16.mxu1 %vm3648_vm1, %v3647_v40  ;;  %v2146_v17 = vmul.f32 %v3613_v13, %v4153_v43 }
 0xe93   :  { %v3461_v19 = vunpack.i.h.bf16 %v3459_v18  ;;  %v3460_v23 = vunpack.i.l.bf16 %v3459_v18  ;;  %v2155_v41 = vpack.c.bf16 %v2147_v25, %v2147_v25 }
 0xe94   :  { %v2163_v26 = vpack.c.bf16 %v3456_v15, %v3456_v15  ;;  %v2162_v28 = vpack.c.bf16 %v3455_v16, %v3455_v16  ;;  %v2154_v39 = vpack.c.bf16 %v2146_v17, %v2146_v17 }
 0xe95   :  { %v2165_v31 = vpack.c.bf16 %v3461_v19, %v3461_v19  ;;  %v2164_v32 = vpack.c.bf16 %v3460_v23, %v3460_v23 }
 0xe96   :  { %v2354_v33 = vsel %vm737_vm3, %v2162_v28, 0  ;;  %v2400_v34 = vsel %vm737_vm3, %v2163_v26, 0 }
 0xe97   :  { %3366 = vmatpush3.bf16.msra.mxu0 %v2354_v33  ;;  %3372 = vmatpush3.bf16.msra.mxu1 %v2400_v34  ;;  %v2446_v42 = vsel %vm737_vm3, %v2164_v32, 0  ;;  %v2492_v38 = vsel %vm737_vm3, %v2165_v31, 0 }
 0xe98   :  { %v3615_v30 = vpop.eup %3614  ;;  %3377 = vmatprep.subr.bf16.mxu0 %v3647_v40  ;;  %3383 = vmatprep.subr.bf16.mxu1 %v3647_v40 }
 0xe99   :  { %v3617_v35 = vpop.eup %3616  ;;  %v2149_v37 = vmul.f32 %v3615_v30, %v4159_v47 }
 0xe9a   :  { %3368 = vmatmul.mubr.msk.bf16.vlgmr.msra.gmra.mrb[68].mxu0 %vm629_vm4, %v2154_v39  ;;  %3374 = vmatmul.mubr.msk.bf16.vlgmr.msra.gmra.mrb[60].mxu1 %vm629_vm4, %v2155_v41  ;;  %v2148_v43 = vmul.f32 %v3617_v35, %v4161_v48 }
 0xe9b   :  { %3378 = vmatpush3.bf16.msra.mxu0 %v2446_v42  ;;  %3384 = vmatpush3.bf16.msra.mxu1 %v2492_v38  ;;  %v2157_v45 = vpack.c.bf16 %v2149_v37, %v2149_v37 }
 0xe9c   :  { %3379 = vmatprep.mubr.msk.bf16.mxu0 %vm3648_vm1, %v3647_v40  ;;  %3385 = vmatprep.mubr.msk.bf16.mxu1 %vm3648_vm1, %v3647_v40  ;;  %v2156_v44 = vpack.c.bf16 %v2148_v43, %v2148_v43 }
 0xea2   :  { %3380 = vmatmul.mubr.msk.bf16.vlgmr.msra.gmra.mrb[72].mxu0 %vm629_vm4, %v2156_v44  ;;  %3386 = vmatmul.mubr.msk.bf16.vlgmr.msra.gmra.mrb[64].mxu1 %vm629_vm4, %v2157_v45  ;;  %v3514_v44 = vld [vmem:[%s4334_s6 + $0x40] ss:$8 sps:$4 sm:$0xff]   ;;  %v3519_v45 = vld [vmem:[%s4334_s6 + $0x54] ss:$8 sps:$4 sm:$0xff]  }
 0xea3   :  { %2710 = vmatprep.mubr.bf16.mxu0 %v3646_v22 }
 0xeee   :  { %v2252_v49 = vpop.f32.mrb[52].mxu1 }
 0xeef   :  { %v3351_v50 = vpop.f32.mrb[53].mxu1 }
 0xef0   :  { %v2255_v52 = vpop.f32.mrb[54].mxu1  ;;  %v3522_v50 = vld [vmem:[%s4334_s6 + $0x64] ss:$8 sps:$4 sm:$0xff]  }
 0xef1   :  { %v3352_v47 = vpop.f32.mrb[55].mxu1  ;;  %v3520_v52 = vld [vmem:[%s4334_s6 + $0x60] ss:$8 sps:$4 sm:$0xff]  }
 0xef2   :  { %v3525_v47 = vld [vmem:[%s4334_s6 + $0x74] ss:$8 sps:$4 sm:$0xff]  }
 0xf07   :  { %v2206_v51 = vpop.f32.mrb[60].mxu0 }
 0xf08   :  { %v3345_v48 = vpop.f32.mrb[61].mxu0 }
 0xf09   :  { %v2209_v53 = vpop.f32.mrb[62].mxu0  ;;  %v3526_v48 = vld [vmem:[%s4336_s8 + $0xc0] sm:$0xff]  }
 0xf0a   :  { %v3346_v54 = vpop.f32.mrb[63].mxu0  ;;  %v3527_v53 = vld [vmem:[%s4336_s8 + $0x80] sm:$0xff]   ;;  %3175 = vmatprep.subr.bf16.mxu1 %v3526_v48 }
 0xf0b   :  { %v3528_v54 = vld [vmem:[%s4336_s8 + $0xc8] sm:$0xff]   ;;  %3176 = vmatpush3.bf16.msra.mxu1 %v3527_v53 }
 0xf0c   :  { %3177 = vmatprep.subr.bf16.mxu1 %v3528_v54 }
 0xf60   :  { %v2298_v55 = vpop.f32.mrb[64].mxu0 }
 0xf61   :  { %2536 = vrot.lane.b32.xlu1 %v2298_v55, %s3653_s19  ;;  %v3357_v40 = vpop.f32.mrb[65].mxu0  ;;  %v3529_v55 = vld [vmem:[%s4336_s8 + $0x88] sm:$0xff]  }
 0xf62   :  { %v2301_v56 = vpop.f32.mrb[66].mxu0  ;;  %v3530_v40 = vld [vmem:[%s4336_s8 + $0xd0] sm:$0xff]   ;;  %3178 = vmatpush3.bf16.msra.mxu1 %v3529_v55 }
 0xf63   :  { %v3358_v57 = vpop.f32.mrb[67].mxu0  ;;  %v3531_v56 = vld [vmem:[%s4336_s8 + $0x90] sm:$0xff]   ;;  %3179 = vmatprep.subr.bf16.mxu1 %v3530_v40 }
 0xf64   :  { %v2344_v58 = vpop.f32.mrb[56].mxu1  ;;  %v3532_v57 = vld [vmem:[%s4336_s8 + $0xd8] sm:$0xff]  }
 0xf65   :  { %v3363_v59 = vpop.f32.mrb[57].mxu1  ;;  %2538 = vrot.lane.b32.xlu1 %v2344_v58, %s3653_s19  ;;  %v3533_v58 = vld [vmem:[%s4336_s8 + $0x98] sm:$0xff]  }
 0xf66   :  { %v2347_v60 = vpop.f32.mrb[58].mxu1  ;;  %3180 = vmatpush3.bf16.msra.mxu1 %v3531_v56  ;;  %v3534_v59 = vld [vmem:[%s4336_s8 + $0xe0] sm:$0xff]  }
 0xf67   :  { %v3364_v22 = vpop.f32.mrb[59].mxu1  ;;  %3181 = vmatprep.subr.bf16.mxu1 %v3532_v57  ;;  %v3535_v60 = vld [vmem:[%s4336_s8 + $0xa0] sm:$0xff]  }
 0xf68   :  { %v3536_v22 = vld [vmem:[%s4336_s8 + $0xe8] sm:$0xff]  }
 0xf6a   :  { %3182 = vmatpush3.bf16.msra.mxu1 %v3533_v58 }
 0xf6b   :  { %3183 = vmatprep.subr.bf16.mxu1 %v3534_v59 }
 0xf6d   :  { %v2390_v61 = vpop.f32.mrb[68].mxu0  ;;  %v2436_v62 = vpop.f32.mrb[60].mxu1 }
 0xf6e   :  { %v3375_v36 = vpop.f32.mrb[61].mxu1  ;;  %2546 = vrot.lane.b32.xlu1 %v2436_v62, %s3654_s20  ;;  %2544 = vrot.lane.b32.xlu0 %v2390_v61, %s3654_s20  ;;  %v3369_v63 = vpop.f32.mrb[69].mxu0 }
 0xf6f   :  { %v2393_v0 = vpop.f32.mrb[70].mxu0  ;;  %v2439_v1 = vpop.f32.mrb[62].mxu1  ;;  %3184 = vmatpush3.bf16.msra.mxu1 %v3535_v60 }
 0xf70   :  { %v3370_v46 = vpop.f32.mrb[71].mxu0  ;;  %v3376_v2 = vpop.f32.mrb[63].mxu1  ;;  %3185 = vmatprep.subr.bf16.mxu1 %v3536_v22 }
 0xf75   :  { %v2482_v3 = vpop.f32.mrb[72].mxu0  ;;  %v2528_v4 = vpop.f32.mrb[64].mxu1 }
 0xf76   :  { %v3387_v5 = vpop.f32.mrb[65].mxu1  ;;  %2554 = vrot.lane.b32.xlu1 %v2528_v4, %s3655_s21  ;;  %2552 = vrot.lane.b32.xlu0 %v2482_v3, %s3655_s21  ;;  %v3381_v6 = vpop.f32.mrb[73].mxu0  ;;  %v3019_v3 = vld [vmem:[%s4332_s4 + $0x1] ss:$0 sm:$0xff] }
 0xf77   :  { %v2485_v7 = vpop.f32.mrb[74].mxu0  ;;  %v2531_v8 = vpop.f32.mrb[66].mxu1 }
 0xf78   :  { %v3382_v9 = vpop.f32.mrb[75].mxu0  ;;  %v3388_v10 = vpop.f32.mrb[67].mxu1  ;;  %v3020_v7 = vld [vmem:[%s4333_s5 + $0x1] ss:$0 sm:$0xff] }
 0xfd3   :  { %v2537_v12 = vpop.permute.xlu1 %2536 }
 0xfd4   :  { %v2558_v15 = vsel %vm231_vm2, %v2206_v51, %v2537_v12  ;;  %v3523_v51 = vld [vmem:[%s4334_s6 + $0x70] ss:$8 sps:$4 sm:$0xff]  }
 0xfd7   :  { %v2539_v11 = vpop.permute.xlu1 %2538 }
 0xfd8   :  { %v2559_v16 = vsel %vm231_vm2, %v2252_v49, %v2539_v11  ;;  %v3517_v49 = vld [vmem:[%s4334_s6 + $0x50] ss:$8 sps:$4 sm:$0xff]   ;;  %v3537_v11 = vld [vmem:[%s4336_s8 + $0xa8] sm:$0xff]  }
 0xfd9   :  { %3186 = vmatpush3.bf16.msra.mxu1 %v3537_v11 }
 0xfe0   :  { %v2547_v13 = vpop.permute.xlu1 %2546  ;;  %v2545_v14 = vpop.permute.xlu0 %2544 }
 0xfe1   :  { %v2561_v18 = vsel %vm1129_vm5, %v2559_v16, %v2547_v13  ;;  %v2560_v19 = vsel %vm1129_vm5, %v2558_v15, %v2545_v14  ;;  %v3538_v13 = vld [vmem:[%s4336_s8 + $0xf0] sm:$0xff]   ;;  %v3540_v15 = vld [vmem:[%s4336_s8 + $0xf8] sm:$0xff]  }
 0xfe2   :  { %v3539_v14 = vld [vmem:[%s4336_s8 + $0xb0] sm:$0xff]   ;;  %3187 = vmatprep.subr.bf16.mxu1 %v3538_v13  ;;  %v3541_v16 = vld [vmem:[%s4336_s8 + $0xb8] sm:$0xff]  }
 0xfe3   :  { %3188 = vmatpush3.bf16.msra.mxu1 %v3539_v14 }
 0xfe4   :  { %3189 = vmatprep.subr.bf16.mxu1 %v3540_v15 }
 0xfe7   :  { %3190 = vmatpush3.bf16.msra.mxu1 %v3541_v16 }
 0xfe8   :  { %v2555_v23 = vpop.permute.xlu1 %2554  ;;  %v2553_v25 = vpop.permute.xlu0 %2552 }
 0xfe9   :  { %v2563_v17 = vsel %vm1132_vm6, %v2561_v18, %v2555_v23  ;;  %v2562_v26 = vsel %vm1132_vm6, %v2560_v19, %v2553_v25  ;;  %v3029_v18 = vld [vmem:[%s4335_s7 + $0x2] sm:$0x3] }
 0xfea   :  { %v2565_v28 = vadd.f32 %v2563_v17, %v4060_v29  ;;  %v2564_v31 = vadd.f32 %v2562_v26, %v4058_v27  ;;  %v3516_v27 = vld [vmem:[%s4334_s6 + $0x44] ss:$8 sps:$4 sm:$0xff]   ;;  %v2628_v19 = vrot.slane %v3029_v18, %v1194_v21  ;;  %v2632_v23 = vrot.slane %v3029_v18, %v1198_v24 }
 0xfeb   :  { %2678 = vmatprep.subr.bf16.mxu0 %v3516_v27 }
 0xfec   :  { %v2573_v32 = vsel %vm41_vm0, %v2565_v28, 0.0  ;;  %v2570_v33 = vsel %vm41_vm0, %v2564_v31, 0.0  ;;  %2679 = vmatpush1.bf16.msra.mxu0 %v3514_v44 }
 0xfed   :  { %2574 = vadd.xlane.f32.xlu1 %v2573_v32  ;;  %2571 = vadd.xlane.f32.xlu0 %v2570_v33 }
 0xfee   :  { %2680 = vmatprep.subr.bf16.mxu0 %v3519_v45 }
 0xff0   :  { %2681 = vmatpush1.bf16.msra.mxu0 %v3517_v49 }
 0xff1   :  { %2682 = vmatprep.subr.bf16.mxu0 %v3522_v50 }
 0xff4   :  { %2683 = vmatpush1.bf16.msra.mxu0 %v3520_v52 }
 0xff5   :  { %2684 = vmatprep.subr.bf16.mxu0 %v3525_v47 }
 0xff8   :  { %2685 = vmatpush1.bf16.msra.mxu0 %v3523_v51 }
0x107a   :  { %v2575_v34 = vpop.xlane.xlu1 %2574  ;;  %v2572_v30 = vpop.xlane.xlu0 %2571 }
0x107b   :  { %v2577_v39 = vmul.f32 0.015625, %v2575_v34  ;;  %v2576_v41 = vmul.f32 0.015625, %v2572_v30 }
0x107d   :  { %v2579_v35 = vsub.f32 %v2565_v28, %v2577_v39  ;;  %v2578_v42 = vsub.f32 %v2564_v31, %v2576_v41 }
0x107f   :  { %v2580_v38 = vmul.f32 %v2578_v42, %v2578_v42  ;;  %v2581_v43 = vmul.f32 %v2579_v35, %v2579_v35 }
0x1081   :  { %v2582_v37 = vsel %vm41_vm0, %v2580_v38, 0.0  ;;  %v2585_v29 = vsel %vm41_vm0, %v2581_v43, 0.0 }
0x1082   :  { %2583 = vadd.xlane.f32.xlu0 %v2582_v37 }
0x1086   :  { %2586 = vadd.xlane.f32.xlu0 %v2585_v29 }
0x110f   :  { %v2584_v61 = vpop.xlane.xlu0 %2583 }
0x1110   :  { %v2588_v62 = vmul.f32 0.015625, %v2584_v61 }
0x1112   :  { %v2590_v36 = vadd.f32 1e-05, %v2588_v62 }
0x1113   :  { %v2587_v63 = vpop.xlane.xlu0 %2586 }
0x1114   :  { %3618 = vrsqrt.f32 %v2590_v36  ;;  %v2589_v0 = vmul.f32 0.015625, %v2587_v63 }
0x1116   :  { %v2591_v1 = vadd.f32 1e-05, %v2589_v0 }
0x1118   :  { %3620 = vrsqrt.f32 %v2591_v1 }
0x111e   :  { %v3619_v46 = vpop.eup %3618 }
0x111f   :  { %v2594_v2 = vmul.f32 %v3619_v46, %v2578_v42 }
0x1121   :  { %v2602_v5 = vmul.f32 %v3019_v3, %v2594_v2 }
0x1122   :  { %v3621_v4 = vpop.eup %3620 }
0x1123   :  { %v2595_v6 = vmul.f32 %v3621_v4, %v2579_v35  ;;  %v2610_v9 = vadd.f32 %v3020_v7, %v2602_v5 }
0x1125   :  { %v2603_v8 = vmul.f32 %v3019_v3, %v2595_v6 }
0x1127   :  { %v2611_v10 = vadd.f32 %v3020_v7, %v2603_v8 }
0x1129   :  { %v2612_v12 = vpack.c.bf16 %v2611_v10, %v2610_v9 }
0x112b   :  { %3038 = vmatmul.mubr.msk.bf16.vlgmr.msra.gmra.mrb[76].mxu0 %vm41_vm0, %v2612_v12 }
0x11fe   :  { %v2712_v25 = vpop.f32.mrb[76].mxu0 }
0x11ff   :  { %v2713_v17 = vadd.f32 %v2712_v25, %v2628_v19  ;;  %v2714_v26 = vpop.f32.mrb[77].mxu0 }
0x1200   :  { %v2715_v28 = vadd.f32 %v2714_v26, %v2632_v23  ;;  %v2716_v31 = vpop.f32.mrb[78].mxu0 }
0x1201   :  { %v2717_v32 = vadd.f32 %v2716_v31, %v2628_v19  ;;  %v2718_v33 = vpop.f32.mrb[79].mxu0  ;;  %v2721_v30 = vmax.f32 %v2713_v17, 0.0 }
0x1202   :  { %v2719_v34 = vadd.f32 %v2718_v33, %v2632_v23  ;;  %v2722_v41 = vmax.f32 %v2715_v28, 0.0 }
0x1203   :  { %v2723_v39 = vmax.f32 %v2717_v32, 0.0 }
0x1204   :  { %v2724_v35 = vmax.f32 %v2719_v34, 0.0 }
0x1205   :  { %v2725_v42 = vpack.c.bf16 %v2723_v39, %v2721_v30 }
0x1206   :  { %v2726_v38 = vpack.c.bf16 %v2724_v35, %v2722_v41 }
0x1208   :  { %2896 = vmatprep.mubr.bf16.mxu1 %v2726_v38 }
0x1209   :  { %2897 = vmatmul.mubr.bf16.vlgmr.msra.gmra.mrb[68].mxu1 %v2725_v42 }
0x12dc   :  { %v3191_v21 = vpop.f32.mrb[68].mxu1 }
0x12dd   :  { %v3192_v24 = vpop.f32.mrb[69].mxu1 }
0x12de   :  { %v3193_v37 = vadd.f32 %v3192_v24, %v3191_v21  ;;  %v3194_v43 = vpop.f32.mrb[70].mxu1 }
0x12df   :  { %v3195_v29 = vpop.f32.mrb[71].mxu1 }
0x12e0   :  { %v2899_v27 = vadd.f32 %v3193_v37, %v3072_v20  ;;  %v3196_v44 = vadd.f32 %v3195_v29, %v3194_v43 }
0x12e2   :  { %v2905_v45 = vadd.f32 %v2899_v27, %v2610_v9  ;;  %v2902_v49 = vadd.f32 %v3196_v44, %v3072_v20 }
0x12e4   :  { %2907 = vst.msk [vmem:[#allocation2] sm:$0xff] %vm41_vm0, %v2905_v45  ;;  %v2906_v50 = vadd.f32 %v2902_v49, %v2611_v10 }
0x12e6   :  { %2908 = vst.msk [vmem:[#allocation2 + $0x8] sm:$0xff] %vm41_vm0, %v2906_v50 }
0x12e7   :  { %3633 = shalt.err (!%p3630_p4)
}
0x12e8   :  { %s3634_s19 = scalar_lea.hbm %s4338_s10, 256 }
0x12e9   :  { %p3635_p5 = scmp.ne.s32.totalorder %s4338_s10, %s3634_s19  ;;  %p3638_p6 = scmp.lt.u32.totalorder %s3634_s19, %s4338_s10 }
0x12eb   :  { %p3640_p7 = pnand %p3638_p6, %p3635_p5 }
0x12ed   :  { %3643 = shalt.err (!%p3640_p7)
}
0x12ee   :  { %s3657_s29 = smov 128   ;;  %s3658_s30 = smov 8  }
0x12ef   :  { %2920 = dma.vmem_to_hbm [thread:$0]  %s2915_s0, 256, %s4338_s10, [#allocation3], %s3657_s29, %s3657_s29, %s3658_s30  }
0x12f0   :  { %3644 = dma.done.wait [#allocation3], 256  }
0x12f1   :  { %3645 = vsyncadd [#allocation3], 4294967040 }
0x12f2   :  { %2924 = vsyncpa [#allocation3], 1 }

</bundles_post_ra>
